<compile_context>
chip_gen: v6e
topology: v6e:2x2x1
jax: 0.10.0
libtpu: 0.0.40
codegen_flags: <defaults>
</compile_context>

<pallas_src>
import functools
import math

import jax
import jax.numpy as jnp
from jax.experimental import pallas as pl
from jax.experimental.pallas import tpu as pltpu


_NEG_BIG = -1e30            # stand-in for torch's float('-inf') key_padding_mask fill
_MASK_SCALE = -1000000.0    # SelfAttention.build_attention_mask semantics (-1e6)
_WEIGHT_DTYPE = jnp.bfloat16            # MXU-native operand dtype (f32 accumulation)
_VMEM_LIMIT = 64 * 1024 * 1024          # explicit budget; <= physical VMEM on v5e/v6e/v7x


# ---------------------------------------------------------------------------
# in-kernel helpers (elementwise math kept f32 on the VPU)
# ---------------------------------------------------------------------------
def _layernorm(x, g, b, eps=1e-5):
    mu = jnp.mean(x, axis=-1, keepdims=True)
    xc = x - mu
    var = jnp.mean(xc * xc, axis=-1, keepdims=True)
    return xc * jax.lax.rsqrt(var + eps) * g + b


def _quick_gelu(x):
    # x * sigmoid(1.702 x) == x / (1 + exp(-1.702 x))
    return x / (1.0 + jnp.exp(-1.702 * x))


def _softmax_rows(s, exact=False):
    m = jnp.max(s, axis=-1, keepdims=True)
    e = jnp.exp(s - m)
    denom = jnp.sum(e, axis=-1, keepdims=True)
    if exact:
        return e / denom                               # exact: probs are returned
    return e * pl.reciprocal(denom, approx=True)       # EUP slot, effectively free


def _mha_heads(q, k, v, mask, num_heads, *, exact_softmax):
    """Per-head attention batched over the batch tile.

    q: (Bt, Sq, D) bf16 (already scaled by 1/sqrt(Dh)); k, v: (Bt, Skv, D) bf16;
    mask: (Bt, 1, Skv) additive f32.  Returns (ctx (Bt, Sq, D) f32, per-head probs)."""
    Dh = q.shape[-1] // num_heads
    ctx_heads, prob_heads = [], []
    for h in range(num_heads):          # static loop; at production Dh (multiple of 128)
        sl = slice(h * Dh, (h + 1) * Dh)  # these lane slices are aligned full tiles
        s = jnp.einsum('bqd,bkd->bqk', q[:, :, sl], k[:, :, sl],
                       preferred_element_type=jnp.float32)
        p = _softmax_rows(s + mask, exact=exact_softmax)
        prob_heads.append(p)
        ctx_heads.append(jnp.einsum('bqk,bkd->bqd', p.astype(q.dtype), v[:, :, sl],
                                    preferred_element_type=jnp.float32))
    # single lane-dense concat feeding the out-proj (no per-head partial stores)
    return jnp.concatenate(ctx_heads, axis=-1), prob_heads


# ---------------------------------------------------------------------------
# fused stack of ResidualAttentionBlocks: grid = (batch_tiles, num_layers)
#   residual stream carried in the output block; per-layer weights streamed over 'layer'.
# ---------------------------------------------------------------------------
def _resblocks_kernel(x_ref, mask_ref,
                      ln1g_ref, ln1b_ref, wq_ref, bq_ref, wk_ref, bk_ref,
                      wv_ref, bv_ref, wo_ref, bo_ref, ln2g_ref, ln2b_ref,
                      wfc_ref, bfc_ref, wpr_ref, bpr_ref,
                      y_ref, *, num_heads):
    layer = pl.program_id(1)

    @pl.when(layer == 0)
    def _():                              # initialize the residual-stream carry
        y_ref[...] = x_ref[...]

    Bt, S, D = y_ref.shape
    Dh = D // num_heads
    scale = 1.0 / math.sqrt(Dh)

    x = y_ref[...].reshape(Bt * S, D)     # f32 residual stream; batch folded into M
    mask = mask_ref[...]                  # (Bt, 1, S) additive key-padding mask

    ln1 = _layernorm(x, ln1g_ref[0], ln1b_ref[0]).astype(_WEIGHT_DTYPE)
    q = (jnp.dot(ln1, wq_ref[0], preferred_element_type=jnp.float32) + bq_ref[0]) * scale
    k = jnp.dot(ln1, wk_ref[0], preferred_element_type=jnp.float32) + bk_ref[0]
    v = jnp.dot(ln1, wv_ref[0], preferred_element_type=jnp.float32) + bv_ref[0]

    ctx, _ = _mha_heads(q.reshape(Bt, S, D).astype(_WEIGHT_DTYPE),
                        k.reshape(Bt, S, D).astype(_WEIGHT_DTYPE),
                        v.reshape(Bt, S, D).astype(_WEIGHT_DTYPE),
                        mask, num_heads, exact_softmax=False)
    ctx = ctx.reshape(Bt * S, D).astype(_WEIGHT_DTYPE)

    attn_out = jnp.dot(ctx, wo_ref[0], preferred_element_type=jnp.float32) + bo_ref[0]
    x1 = x + attn_out

    ln2 = _layernorm(x1, ln2g_ref[0], ln2b_ref[0]).astype(_WEIGHT_DTYPE)
    hfc = jnp.dot(ln2, wfc_ref[0], preferred_element_type=jnp.float32) + bfc_ref[0]
    act = _quick_gelu(hfc).astype(_WEIGHT_DTYPE)
    mlp = jnp.dot(act, wpr_ref[0], preferred_element_type=jnp.float32) + bpr_ref[0]

    y_ref[...] = (x1 + mlp).reshape(Bt, S, D)


# ---------------------------------------------------------------------------
# fused ResidualCrossAttention (SelfAttention + MLP), grid = (batch_tiles,)
# ---------------------------------------------------------------------------
def _cross_kernel(x_ref, kv_ref, mask_ref,
                  ln1g_ref, ln1b_ref, wq_ref, bq_ref, wk_ref, bk_ref,
                  wv_ref, bv_ref, ln2g_ref, ln2b_ref,
                  wfc_ref, bfc_ref, wpr_ref, bpr_ref,
                  y_ref, attn_ref, *, num_heads):
    Bt, Sq, D = x_ref.shape
    Skv = kv_ref.shape[1]
    Dh = D // num_heads
    scale = 1.0 / math.sqrt(Dh)

    x = x_ref[...].reshape(Bt * Sq, D)
    kvx = kv_ref[...].reshape(Bt * Skv, D)
    mask = mask_ref[...]                   # (Bt, 1, Skv) additive (-1e6 where masked)

    ln_x = _layernorm(x, ln1g_ref[...], ln1b_ref[...]).astype(_WEIGHT_DTYPE)
    ln_kv = _layernorm(kvx, ln1g_ref[...], ln1b_ref[...]).astype(_WEIGHT_DTYPE)

    q = (jnp.dot(ln_x, wq_ref[...], preferred_element_type=jnp.float32) + bq_ref[...]) * scale
    k = jnp.dot(ln_kv, wk_ref[...], preferred_element_type=jnp.float32) + bk_ref[...]
    v = jnp.dot(ln_kv, wv_ref[...], preferred_element_type=jnp.float32) + bv_ref[...]

    # exact softmax here: these probabilities are returned to the caller.
    # TODO(synk): nn.Dropout(p=0.1) on attention probs is identity in eval mode; skipped.
    # TODO(synk): flash-tile the Skv axis (online softmax) for long KV on v7x (64 MiB VMEM).
    ctx, prob_heads = _mha_heads(q.reshape(Bt, Sq, D).astype(_WEIGHT_DTYPE),
                                 k.reshape(Bt, Skv, D).astype(_WEIGHT_DTYPE),
                                 v.reshape(Bt, Skv, D).astype(_WEIGHT_DTYPE),
                                 mask, num_heads, exact_softmax=True)

    # single store of all heads' attention weights (f32 to match module semantics)
    attn_ref[...] = jnp.stack(prob_heads, axis=1)      # (Bt, H, Sq, Skv)

    x1 = x + ctx.reshape(Bt * Sq, D)                   # SelfAttention has no out-proj

    ln2 = _layernorm(x1, ln2g_ref[...], ln2b_ref[...]).astype(_WEIGHT_DTYPE)
    hfc = jnp.dot(ln2, wfc_ref[...], preferred_element_type=jnp.float32) + bfc_ref[...]
    act = _quick_gelu(hfc).astype(_WEIGHT_DTYPE)
    mlp = jnp.dot(act, wpr_ref[...], preferred_element_type=jnp.float32) + bpr_ref[...]
    y_ref[...] = (x1 + mlp).reshape(Bt, Sq, D)


# ---------------------------------------------------------------------------
# wrappers
# ---------------------------------------------------------------------------
def _batch_tile(B):
    # Fold several batches into the matmul M dim (per-grid-step overhead ~0.35us; MXU wants
    # M in the hundreds) while keeping the batch axis available for megacore sharding.
    for bt in (8, 4, 2, 1):
        if bt <= B and B % bt == 0:
            return bt
    return 1


def _resblocks_call(x, mask_add, bp, num_heads):
    B, S, D = x.shape
    L = bp['wq'].shape[0]
    Bt = _batch_tile(B)

    keys = ('ln1_g', 'ln1_b', 'wq', 'bq', 'wk', 'bk', 'wv', 'bv',
            'wo', 'bo', 'ln2_g', 'ln2_b', 'wfc', 'bfc', 'wpr', 'bpr')
    w_args = [bp[k] for k in keys]

    x_map = lambda b, l: (b, 0, 0)           # constant in l -> stays VMEM-resident
    w_map = lambda b, l: (l, 0, 0)           # streamed (double-buffered) per layer
    w_specs = [pl.BlockSpec((1,) + a.shape[1:], w_map) for a in w_args]

    return pl.pallas_call(
        functools.partial(_resblocks_kernel, num_heads=num_heads),
        out_shape=jax.ShapeDtypeStruct((B, S, D), jnp.float32),
        grid_spec=pltpu.PrefetchScalarGridSpec(
            num_scalar_prefetch=0,
            grid=(B // Bt, L),
            in_specs=[pl.BlockSpec((Bt, S, D), x_map),
                      pl.BlockSpec((Bt, 1, S), x_map)] + w_specs,
            out_specs=pl.BlockSpec((Bt, S, D), x_map),
        ),
        compiler_params=pltpu.CompilerParams(
            dimension_semantics=("parallel", "arbitrary"),
            vmem_limit_bytes=_VMEM_LIMIT),
    )(x, mask_add, *w_args)


def _cross_call(x, kvb, kv_mask_add, cp, num_heads):
    B, Sq, D = x.shape
    Skv = kvb.shape[1]
    H = num_heads
    Bt = _batch_tile(B)

    keys = ('ln1_g', 'ln1_b', 'wq', 'bq', 'wk', 'bk', 'wv', 'bv',
            'ln2_g', 'ln2_b', 'wfc', 'bfc', 'wpr', 'bpr')
    w_args = [cp[k] for k in keys]

    def const_spec(shape):
        zeros = (0,) * len(shape)
        return pl.BlockSpec(shape, lambda b, _z=zeros: _z)   # weights VMEM-resident

    w_specs = [const_spec(a.shape) for a in w_args]

    return pl.pallas_call(
        functools.partial(_cross_kernel, num_heads=num_heads),
        out_shape=(jax.ShapeDtypeStruct((B, Sq, D), jnp.float32),
                   jax.ShapeDtypeStruct((B, H, Sq, Skv), jnp.float32)),
        grid_spec=pltpu.PrefetchScalarGridSpec(
            num_scalar_prefetch=0,
            grid=(B // Bt,),
            in_specs=[pl.BlockSpec((Bt, Sq, D), lambda b: (b, 0, 0)),
                      pl.BlockSpec((Bt, Skv, D), lambda b: (b, 0, 0)),
                      pl.BlockSpec((Bt, 1, Skv), lambda b: (b, 0, 0))] + w_specs,
            out_specs=[pl.BlockSpec((Bt, Sq, D), lambda b: (b, 0, 0)),
                       pl.BlockSpec((Bt, H, Sq, Skv), lambda b: (b, 0, 0, 0))],
        ),
        compiler_params=pltpu.CompilerParams(
            dimension_semantics=("parallel",),
            vmem_limit_bytes=_VMEM_LIMIT),
    )(x, kvb, kv_mask_add, *w_args)


def pack_params(params, d_model):
    """One-time conversion of torch-layout params into stacked, pre-transposed, bf16
    kernel operands (no per-forward transposes; q/k/v projections split)."""
    D = d_model
    f32 = jnp.float32
    wdt = _WEIGHT_DTYPE

    def pack_block_stack(blocks):
        def stack(fn):
            return jnp.stack([fn(p) for p in blocks], axis=0)
        return dict(
            ln1_g=stack(lambda p: p['ln1_g'].reshape(1, D).astype(f32)),
            ln1_b=stack(lambda p: p['ln1_b'].reshape(1, D).astype(f32)),
            wq=stack(lambda p: p['in_w'][0 * D:1 * D].T.astype(wdt)),
            wk=stack(lambda p: p['in_w'][1 * D:2 * D].T.astype(wdt)),
            wv=stack(lambda p: p['in_w'][2 * D:3 * D].T.astype(wdt)),
            bq=stack(lambda p: p['in_b'][0 * D:1 * D].reshape(1, D).astype(f32)),
            bk=stack(lambda p: p['in_b'][1 * D:2 * D].reshape(1, D).astype(f32)),
            bv=stack(lambda p: p['in_b'][2 * D:3 * D].reshape(1, D).astype(f32)),
            wo=stack(lambda p: p['out_w'].T.astype(wdt)),
            bo=stack(lambda p: p['out_b'].reshape(1, D).astype(f32)),
            ln2_g=stack(lambda p: p['ln2_g'].reshape(1, D).astype(f32)),
            ln2_b=stack(lambda p: p['ln2_b'].reshape(1, D).astype(f32)),
            wfc=stack(lambda p: p['fc_w'].T.astype(wdt)),
            bfc=stack(lambda p: p['fc_b'].reshape(1, 4 * D).astype(f32)),
            wpr=stack(lambda p: p['pr_w'].T.astype(wdt)),
            bpr=stack(lambda p: p['pr_b'].reshape(1, D).astype(f32)),
        )

    c = params['cross']
    cross = dict(
        ln1_g=c['ln1_g'].reshape(1, D).astype(f32),
        ln1_b=c['ln1_b'].reshape(1, D).astype(f32),
        wq=c['q_w'].T.astype(wdt), bq=c['q_b'].reshape(1, D).astype(f32),
        wk=c['k_w'].T.astype(wdt), bk=c['k_b'].reshape(1, D).astype(f32),
        wv=c['v_w'].T.astype(wdt), bv=c['v_b'].reshape(1, D).astype(f32),
        ln2_g=c['ln2_g'].reshape(1, D).astype(f32),
        ln2_b=c['ln2_b'].reshape(1, D).astype(f32),
        wfc=c['fc_w'].T.astype(wdt), bfc=c['fc_b'].reshape(1, 4 * D).astype(f32),
        wpr=c['pr_w'].T.astype(wdt), bpr=c['pr_b'].reshape(1, D).astype(f32),
    )
    blocks = pack_block_stack(params['blocks']) if params['blocks'] else None
    return dict(blocks=blocks, cross=cross)


def transformer_forward(q, kv, q_mask, kv_mask, packed, num_heads):
    """q: (Sq, B, D), kv: (Skv, B, D); masks bool (B, Sq) / (B, Skv).

    Returns (x (Sq, B, D), attn_weights (B, H, Sq, Skv)) — matches Transformer.forward."""
    Sq, B, D = q.shape
    Skv = kv.shape[0]
    x = jnp.transpose(q.astype(jnp.float32), (1, 0, 2))      # (B, Sq, D)
    kvb = jnp.transpose(kv.astype(jnp.float32), (1, 0, 2))   # (B, Skv, D)
    q_mask_add = q_mask.astype(jnp.float32).reshape(B, 1, Sq) * _NEG_BIG
    kv_mask_add = kv_mask.astype(jnp.float32).reshape(B, 1, Skv) * _MASK_SCALE

    if packed['blocks'] is not None:
        x = _resblocks_call(x, q_mask_add, packed['blocks'], num_heads)
    x, attn_w = _cross_call(x, kvb, kv_mask_add, packed['cross'], num_heads)
    return jnp.transpose(x, (1, 0, 2)), attn_w


# ---------------------------------------------------------------------------
# pure-JAX reference (mirrors PyTorch forward exactly, eval mode, f32)
# ---------------------------------------------------------------------------
def _ln_ref(x, g, b, eps=1e-5):
    mu = jnp.mean(x, axis=-1, keepdims=True)
    var = jnp.mean((x - mu) ** 2, axis=-1, keepdims=True)
    return (x - mu) / jnp.sqrt(var + eps) * g + b


def _ref_resblock(x, q_mask, p, H):
    S, B, D = x.shape
    Dh = D // H
    lx = _ln_ref(x, p['ln1_g'], p['ln1_b'])
    qkv = lx @ p['in_w'].T + p['in_b']
    q, k, v = qkv[..., :D], qkv[..., D:2 * D], qkv[..., 2 * D:]

    def heads(t):
        return jnp.transpose(t.reshape(S, B, H, Dh), (1, 2, 0, 3))

    qh, kh, vh = heads(q) / math.sqrt(Dh), heads(k), heads(v)
    scores = jnp.einsum('bhqd,bhkd->bhqk', qh, kh)
    scores = scores + q_mask.astype(jnp.float32)[:, None, None, :] * _NEG_BIG
    probs = jax.nn.softmax(scores, axis=-1)
    ctx = jnp.einsum('bhqk,bhkd->bhqd', probs, vh)
    ctx = jnp.transpose(ctx, (2, 0, 1, 3)).reshape(S, B, D)
    x = x + (ctx @ p['out_w'].T + p['out_b'])
    h2 = _ln_ref(x, p['ln2_g'], p['ln2_b']) @ p['fc_w'].T + p['fc_b']
    h2 = h2 * jax.nn.sigmoid(1.702 * h2)
    return x + (h2 @ p['pr_w'].T + p['pr_b'])


def _ref_cross(x, kv, kv_mask, p, H):
    Sq, B, D = x.shape
    Skv = kv.shape[0]
    Dh = D // H
    ln_x = _ln_ref(x, p['ln1_g'], p['ln1_b'])
    ln_kv = _ln_ref(kv, p['ln1_g'], p['ln1_b'])
    xq = jnp.transpose(ln_x, (1, 0, 2))
    xk = jnp.transpose(ln_kv, (1, 0, 2))
    q = xq @ p['q_w'].T + p['q_b']
    k = xk @ p['k_w'].T + p['k_b']
    v = xk @ p['v_w'].T + p['v_b']

    def heads(t, S):
        return jnp.transpose(t.reshape(B, S, H, Dh), (0, 2, 1, 3))

    qh, kh, vh = heads(q, Sq), heads(k, Skv), heads(v, Skv)
    scores = jnp.einsum('bhqd,bhkd->bhqk', qh, kh) / math.sqrt(Dh)
    scores = scores + kv_mask.astype(jnp.float32)[:, None, None, :] * _MASK_SCALE
    probs = jax.nn.softmax(scores, axis=-1)
    ctx = jnp.einsum('bhqk,bhkd->bhqd', probs, vh)
    ctx = jnp.transpose(jnp.transpose(ctx, (0, 2, 1, 3)).reshape(B, Sq, D), (1, 0, 2))
    x = x + ctx
    h2 = _ln_ref(x, p['ln2_g'], p['ln2_b']) @ p['fc_w'].T + p['fc_b']
    h2 = h2 * jax.nn.sigmoid(1.702 * h2)
    return x + (h2 @ p['pr_w'].T + p['pr_b']), probs


def _reference(q, kv, q_mask, kv_mask, params, H):
    x = q.astype(jnp.float32)
    for p in params['blocks']:
        x = _ref_resblock(x, q_mask, p, H)
    return _ref_cross(x, kv.astype(jnp.float32), kv_mask, params['cross'], H)


# ---------------------------------------------------------------------------
# deterministic parameter init (torch Linear layout: weight (out, in), bias (out,))
# ---------------------------------------------------------------------------
def _init_block(key, D):
    ks = jax.random.split(key, 12)
    n = lambda k, shape, s=0.1: jax.random.normal(k, shape, jnp.float32) * s
    return dict(
        ln1_g=1.0 + n(ks[0], (D,)), ln1_b=n(ks[1], (D,)),
        in_w=n(ks[2], (3 * D, D)), in_b=n(ks[3], (3 * D,)),
        out_w=n(ks[4], (D, D)), out_b=n(ks[5], (D,)),
        ln2_g=1.0 + n(ks[6], (D,)), ln2_b=n(ks[7], (D,)),
        fc_w=n(ks[8], (4 * D, D)), fc_b=n(ks[9], (4 * D,)),
        pr_w=n(ks[10], (D, 4 * D)), pr_b=n(ks[11], (D,)),
    )


def _init_cross(key, D):
    ks = jax.random.split(key, 14)
    n = lambda k, shape, s=0.1: jax.random.normal(k, shape, jnp.float32) * s
    return dict(
        ln1_g=1.0 + n(ks[0], (D,)), ln1_b=n(ks[1], (D,)),
        q_w=n(ks[2], (D, D)), q_b=n(ks[3], (D,)),
        k_w=n(ks[4], (D, D)), k_b=n(ks[5], (D,)),
        v_w=n(ks[6], (D, D)), v_b=n(ks[7], (D,)),
        ln2_g=1.0 + n(ks[8], (D,)), ln2_b=n(ks[9], (D,)),
        fc_w=n(ks[10], (4 * D, D)), fc_b=n(ks[11], (4 * D,)),
        pr_w=n(ks[12], (D, 4 * D)), pr_b=n(ks[13], (D,)),
    )


if __name__ == "__main__":
    D, H, layers = 32, 4, 3           # width=32, heads=4 (Dh=8), 2 resblocks + cross
    B, Sq, Skv = 2, 8, 16

    key = jax.random.PRNGKey(0)
    k_q, k_kv, k_par = jax.random.split(key, 3)
    q = jax.random.normal(k_q, (Sq, B, D), jnp.float32)
    kv = jax.random.normal(k_kv, (Skv, B, D), jnp.float32)

    # bool masks (True == padded / ignored); no row is fully masked
    q_mask = jnp.zeros((B, Sq), dtype=jnp.bool_).at[1, 6:].set(True)
    kv_mask = (jnp.zeros((B, Skv), dtype=jnp.bool_)
               .at[1, 12:].set(True)
               .at[0, 15].set(True))

    pkeys = jax.random.split(k_par, layers)
    params = dict(
        blocks=[_init_block(pkeys[i], D) for i in range(layers - 1)],
        cross=_init_cross(pkeys[-1], D),
    )
    packed = pack_params(params, D)   # one-time packing (pre-transposed, stacked, bf16)

    out, attn_w = transformer_forward(q, kv, q_mask, kv_mask, packed, H)
    jax.block_until_ready((out, attn_w))

    out_ref, attn_ref = _reference(q, kv, q_mask, kv_mask, params, H)

    assert out.shape == (Sq, B, D)
    assert attn_w.shape == (B, H, Sq, Skv)
    # Tolerances account for bf16 MXU operands (f32 accumulation) and the EUP approx
    # softmax reciprocal in the self-attention blocks; the reference stays pure f32.
    err_out = float(jnp.max(jnp.abs(out - out_ref)))
    err_att = float(jnp.max(jnp.abs(attn_w - attn_ref)))
    assert jnp.allclose(out, out_ref, atol=4e-2, rtol=2e-2), err_out
    assert jnp.allclose(attn_w, attn_ref, atol=1e-2, rtol=1e-2), err_att

    print("KERNEL_OK")
</pallas_src>

<mosaic_0001>
module attributes {stable_mosaic.version = 11 : i64} {
  func.func @_resblocks_kernel(%arg0: i32, %arg1: i32, %arg2: memref<2x8x32xf32, #tpu.memory_space<vmem>>, %arg3: memref<2x1x8xf32, #tpu.memory_space<vmem>>, %arg4: memref<1x1x32xf32, #tpu.memory_space<vmem>>, %arg5: memref<1x1x32xf32, #tpu.memory_space<vmem>>, %arg6: memref<1x32x32xbf16, #tpu.memory_space<vmem>>, %arg7: memref<1x1x32xf32, #tpu.memory_space<vmem>>, %arg8: memref<1x32x32xbf16, #tpu.memory_space<vmem>>, %arg9: memref<1x1x32xf32, #tpu.memory_space<vmem>>, %arg10: memref<1x32x32xbf16, #tpu.memory_space<vmem>>, %arg11: memref<1x1x32xf32, #tpu.memory_space<vmem>>, %arg12: memref<1x32x32xbf16, #tpu.memory_space<vmem>>, %arg13: memref<1x1x32xf32, #tpu.memory_space<vmem>>, %arg14: memref<1x1x32xf32, #tpu.memory_space<vmem>>, %arg15: memref<1x1x32xf32, #tpu.memory_space<vmem>>, %arg16: memref<1x32x128xbf16, #tpu.memory_space<vmem>>, %arg17: memref<1x1x128xf32, #tpu.memory_space<vmem>>, %arg18: memref<1x128x32xbf16, #tpu.memory_space<vmem>>, %arg19: memref<1x1x32xf32, #tpu.memory_space<vmem>>, %arg20: memref<2x8x32xf32, #tpu.memory_space<vmem>>) attributes {dimension_semantics = [#tpu.dimension_semantics<parallel>, #tpu.dimension_semantics<arbitrary>], iteration_bounds = array<i64: 1, 2>, scalar_prefetch = 0 : i64, scratch_operands = 0 : i64, tpu.core_type = #tpu.core_type<tc>, window_params = [{transform_indices = @transform_0, window_bounds = array<i64: 2, 8, 32>}, {transform_indices = @transform_1, window_bounds = array<i64: 2, 1, 8>}, {transform_indices = @transform_2, window_bounds = array<i64: 1, 1, 32>}, {transform_indices = @transform_3, window_bounds = array<i64: 1, 1, 32>}, {transform_indices = @transform_4, window_bounds = array<i64: 1, 32, 32>}, {transform_indices = @transform_5, window_bounds = array<i64: 1, 1, 32>}, {transform_indices = @transform_6, window_bounds = array<i64: 1, 32, 32>}, {transform_indices = @transform_7, window_bounds = array<i64: 1, 1, 32>}, {transform_indices = @transform_8, window_bounds = array<i64: 1, 32, 32>}, {transform_indices = @transform_9, window_bounds = array<i64: 1, 1, 32>}, {transform_indices = @transform_10, window_bounds = array<i64: 1, 32, 32>}, {transform_indices = @transform_11, window_bounds = array<i64: 1, 1, 32>}, {transform_indices = @transform_12, window_bounds = array<i64: 1, 1, 32>}, {transform_indices = @transform_13, window_bounds = array<i64: 1, 1, 32>}, {transform_indices = @transform_14, window_bounds = array<i64: 1, 32, 128>}, {transform_indices = @transform_15, window_bounds = array<i64: 1, 1, 128>}, {transform_indices = @transform_16, window_bounds = array<i64: 1, 128, 32>}, {transform_indices = @transform_17, window_bounds = array<i64: 1, 1, 32>}, {transform_indices = @transform_18, window_bounds = array<i64: 2, 8, 32>}]} {
    %c0_i32 = arith.constant 0 : i32
    %0 = arith.cmpi eq, %arg1, %c0_i32 : i32
    %1 = arith.extui %0 : i1 to i32
    %c0_i32_0 = arith.constant 0 : i32
    %2 = arith.cmpi ne, %1, %c0_i32_0 : i32
    scf.if %2 {
      %c0_91 = arith.constant 0 : index
      %c0_92 = arith.constant 0 : index
      %c0_93 = arith.constant 0 : index
      %192 = vector.load %arg2[%c0_91, %c0_92, %c0_93] : memref<2x8x32xf32, #tpu.memory_space<vmem>>, vector<2x8x32xf32>
      %c0_94 = arith.constant 0 : index
      %c0_95 = arith.constant 0 : index
      %c0_96 = arith.constant 0 : index
      %193 = vector.load %arg20[%c0_94, %c0_95, %c0_96] : memref<2x8x32xf32, #tpu.memory_space<vmem>>, vector<2x8x32xf32>
      tpu.vector_store %arg20[%c0_94, %c0_95, %c0_96], %192 {strides = array<i32>} : memref<2x8x32xf32, #tpu.memory_space<vmem>>, vector<2x8x32xf32>,
    } else {
    }
    %c0 = arith.constant 0 : index
    %c0_1 = arith.constant 0 : index
    %c0_2 = arith.constant 0 : index
    %3 = vector.load %arg20[%c0, %c0_1, %c0_2] : memref<2x8x32xf32, #tpu.memory_space<vmem>>, vector<2x8x32xf32>
    %4 = vector.shape_cast %3 : vector<2x8x32xf32> to vector<16x32xf32>
    %c0_3 = arith.constant 0 : index
    %c0_4 = arith.constant 0 : index
    %c0_5 = arith.constant 0 : index
    %5 = vector.load %arg3[%c0_3, %c0_4, %c0_5] : memref<2x1x8xf32, #tpu.memory_space<vmem>>, vector<2x1x8xf32>
    %c0_6 = arith.constant 0 : index
    %c0_7 = arith.constant 0 : index
    %c0_8 = arith.constant 0 : index
    %6 = vector.load %arg4[%c0_6, %c0_7, %c0_8] : memref<1x1x32xf32, #tpu.memory_space<vmem>>, vector<1x1x32xf32>
    %7 = vector.shape_cast %6 : vector<1x1x32xf32> to vector<1x32xf32>
    %c0_9 = arith.constant 0 : index
    %c0_10 = arith.constant 0 : index
    %c0_11 = arith.constant 0 : index
    %8 = vector.load %arg5[%c0_9, %c0_10, %c0_11] : memref<1x1x32xf32, #tpu.memory_space<vmem>>, vector<1x1x32xf32>
    %9 = vector.shape_cast %8 : vector<1x1x32xf32> to vector<1x32xf32>
    %cst = arith.constant dense<0.000000e+00> : vector<16xf32>
    %10 = vector.multi_reduction <add>, %4, %cst [1] : vector<16x32xf32> to vector<16xf32>
    %11 = vector.shape_cast %10 : vector<16xf32> to vector<16x1xf32>
    %cst_12 = arith.constant 3.200000e+01 : f32
    %12 = vector.broadcast %cst_12 : f32 to vector<16x1xf32>
    %13 = arith.divf %11, %12 : vector<16x1xf32>
    %14 = vector.broadcast %13 : vector<16x1xf32> to vector<16x32xf32>
    %15 = arith.subf %4, %14 : vector<16x32xf32>
    %16 = arith.mulf %15, %15 : vector<16x32xf32>
    %cst_13 = arith.constant dense<0.000000e+00> : vector<16xf32>
    %17 = vector.multi_reduction <add>, %16, %cst_13 [1] : vector<16x32xf32> to vector<16xf32>
    %18 = vector.shape_cast %17 : vector<16xf32> to vector<16x1xf32>
    %cst_14 = arith.constant 3.200000e+01 : f32
    %19 = vector.broadcast %cst_14 : f32 to vector<16x1xf32>
    %20 = arith.divf %18, %19 : vector<16x1xf32>
    %cst_15 = arith.constant 9.99999974E-6 : f32
    %21 = vector.broadcast %cst_15 : f32 to vector<16x1xf32>
    %22 = arith.addf %20, %21 : vector<16x1xf32>
    %23 = math.rsqrt %22 : vector<16x1xf32>
    %24 = vector.broadcast %23 : vector<16x1xf32> to vector<16x32xf32>
    %25 = arith.mulf %15, %24 : vector<16x32xf32>
    %26 = vector.broadcast %7 : vector<1x32xf32> to vector<16x32xf32>
    %27 = arith.mulf %25, %26 : vector<16x32xf32>
    %28 = vector.broadcast %9 : vector<1x32xf32> to vector<16x32xf32>
    %29 = arith.addf %27, %28 : vector<16x32xf32>
    %30 = arith.truncf %29 : vector<16x32xf32> to vector<16x32xbf16>
    %c0_16 = arith.constant 0 : index
    %c0_17 = arith.constant 0 : index
    %c0_18 = arith.constant 0 : index
    %31 = vector.load %arg6[%c0_16, %c0_17, %c0_18] : memref<1x32x32xbf16, #tpu.memory_space<vmem>>, vector<1x32x32xbf16>
    %32 = vector.shape_cast %31 : vector<1x32x32xbf16> to vector<32x32xbf16>
    %cst_19 = arith.constant dense<0.000000e+00> : vector<16x32xf32>
    %33 = tpu.matmul %30, %32, %cst_19 {dimension_numbers = #tpu.dot_dimension_numbers<[1], [0], [0], [1], [0, 0, 1, 1], [], []>} : vector<16x32xbf16>, vector<32x32xbf16>, vector<16x32xf32> -> vector<16x32xf32>
    %c0_20 = arith.constant 0 : index
    %c0_21 = arith.constant 0 : index
    %c0_22 = arith.constant 0 : index
    %34 = vector.load %arg7[%c0_20, %c0_21, %c0_22] : memref<1x1x32xf32, #tpu.memory_space<vmem>>, vector<1x1x32xf32>
    %35 = vector.shape_cast %34 : vector<1x1x32xf32> to vector<1x32xf32>
    %36 = vector.broadcast %35 : vector<1x32xf32> to vector<16x32xf32>
    %37 = arith.addf %33, %36 : vector<16x32xf32>
    %cst_23 = arith.constant 0.353553385 : f32
    %38 = vector.broadcast %cst_23 : f32 to vector<16x32xf32>
    %39 = arith.mulf %37, %38 : vector<16x32xf32>
    %c0_24 = arith.constant 0 : index
    %c0_25 = arith.constant 0 : index
    %c0_26 = arith.constant 0 : index
    %40 = vector.load %arg8[%c0_24, %c0_25, %c0_26] : memref<1x32x32xbf16, #tpu.memory_space<vmem>>, vector<1x32x32xbf16>
    %41 = vector.shape_cast %40 : vector<1x32x32xbf16> to vector<32x32xbf16>
    %cst_27 = arith.constant dense<0.000000e+00> : vector<16x32xf32>
    %42 = tpu.matmul %30, %41, %cst_27 {dimension_numbers = #tpu.dot_dimension_numbers<[1], [0], [0], [1], [0, 0, 1, 1], [], []>} : vector<16x32xbf16>, vector<32x32xbf16>, vector<16x32xf32> -> vector<16x32xf32>
    %c0_28 = arith.constant 0 : index
    %c0_29 = arith.constant 0 : index
    %c0_30 = arith.constant 0 : index
    %43 = vector.load %arg9[%c0_28, %c0_29, %c0_30] : memref<1x1x32xf32, #tpu.memory_space<vmem>>, vector<1x1x32xf32>
    %44 = vector.shape_cast %43 : vector<1x1x32xf32> to vector<1x32xf32>
    %45 = vector.broadcast %44 : vector<1x32xf32> to vector<16x32xf32>
    %46 = arith.addf %42, %45 : vector<16x32xf32>
    %c0_31 = arith.constant 0 : index
    %c0_32 = arith.constant 0 : index
    %c0_33 = arith.constant 0 : index
    %47 = vector.load %arg10[%c0_31, %c0_32, %c0_33] : memref<1x32x32xbf16, #tpu.memory_space<vmem>>, vector<1x32x32xbf16>
    %48 = vector.shape_cast %47 : vector<1x32x32xbf16> to vector<32x32xbf16>
    %cst_34 = arith.constant dense<0.000000e+00> : vector<16x32xf32>
    %49 = tpu.matmul %30, %48, %cst_34 {dimension_numbers = #tpu.dot_dimension_numbers<[1], [0], [0], [1], [0, 0, 1, 1], [], []>} : vector<16x32xbf16>, vector<32x32xbf16>, vector<16x32xf32> -> vector<16x32xf32>
    %c0_35 = arith.constant 0 : index
    %c0_36 = arith.constant 0 : index
    %c0_37 = arith.constant 0 : index
    %50 = vector.load %arg11[%c0_35, %c0_36, %c0_37] : memref<1x1x32xf32, #tpu.memory_space<vmem>>, vector<1x1x32xf32>
    %51 = vector.shape_cast %50 : vector<1x1x32xf32> to vector<1x32xf32>
    %52 = vector.broadcast %51 : vector<1x32xf32> to vector<16x32xf32>
    %53 = arith.addf %49, %52 : vector<16x32xf32>
    %54 = vector.shape_cast %39 : vector<16x32xf32> to vector<2x8x32xf32>
    %55 = arith.truncf %54 : vector<2x8x32xf32> to vector<2x8x32xbf16>
    %56 = vector.shape_cast %46 : vector<16x32xf32> to vector<2x8x32xf32>
    %57 = arith.truncf %56 : vector<2x8x32xf32> to vector<2x8x32xbf16>
    %58 = vector.shape_cast %53 : vector<16x32xf32> to vector<2x8x32xf32>
    %59 = arith.truncf %58 : vector<2x8x32xf32> to vector<2x8x32xbf16>
    %60 = vector.extract_strided_slice %55 {offsets = [0, 0, 0], sizes = [2, 8, 8], strides = [1, 1, 1]} : vector<2x8x32xbf16> to vector<2x8x8xbf16>
    %61 = vector.extract_strided_slice %57 {offsets = [0, 0, 0], sizes = [2, 8, 8], strides = [1, 1, 1]} : vector<2x8x32xbf16> to vector<2x8x8xbf16>
    "tpu.trace_start"() <{level = 10 : i32, message = "bqd,bkd->bqk"}> : () -> ()
    %cst_38 = arith.constant dense<0.000000e+00> : vector<2x8x8xf32>
    %62 = tpu.matmul %60, %61, %cst_38 {dimension_numbers = #tpu.dot_dimension_numbers<[2], [2], [1], [1], [0, 0, 0, 1, 1, 1], [0], [0]>} : vector<2x8x8xbf16>, vector<2x8x8xbf16>, vector<2x8x8xf32> -> vector<2x8x8xf32>
    "tpu.trace_stop"() : () -> ()
    %63 = vector.broadcast %5 : vector<2x1x8xf32> to vector<2x8x8xf32>
    %64 = arith.addf %62, %63 : vector<2x8x8xf32>
    %cst_39 = arith.constant dense<0xFF800000> : vector<2x8xf32>
    %65 = vector.multi_reduction <maximumf>, %64, %cst_39 [2] : vector<2x8x8xf32> to vector<2x8xf32>
    %66 = vector.shape_cast %65 : vector<2x8xf32> to vector<2x8x1xf32>
    %67 = vector.broadcast %66 : vector<2x8x1xf32> to vector<2x8x8xf32>
    %68 = arith.subf %64, %67 : vector<2x8x8xf32>
    %69 = math.exp %68 : vector<2x8x8xf32>
    %cst_40 = arith.constant dense<0.000000e+00> : vector<2x8xf32>
    %70 = vector.multi_reduction <add>, %69, %cst_40 [2] : vector<2x8x8xf32> to vector<2x8xf32>
    %71 = vector.shape_cast %70 : vector<2x8xf32> to vector<2x8x1xf32>
    %72 = tpu.reciprocal %71 {approx = true} : vector<2x8x1xf32> -> vector<2x8x1xf32>
    %73 = vector.broadcast %72 : vector<2x8x1xf32> to vector<2x8x8xf32>
    %74 = arith.mulf %69, %73 : vector<2x8x8xf32>
    %75 = arith.truncf %74 : vector<2x8x8xf32> to vector<2x8x8xbf16>
    %76 = vector.extract_strided_slice %59 {offsets = [0, 0, 0], sizes = [2, 8, 8], strides = [1, 1, 1]} : vector<2x8x32xbf16> to vector<2x8x8xbf16>
    "tpu.trace_start"() <{level = 10 : i32, message = "bqk,bkd->bqd"}> : () -> ()
    %cst_41 = arith.constant dense<0.000000e+00> : vector<2x8x8xf32>
    %77 = tpu.matmul %75, %76, %cst_41 {dimension_numbers = #tpu.dot_dimension_numbers<[2], [1], [1], [2], [0, 0, 0, 1, 1, 2], [0], [0]>} : vector<2x8x8xbf16>, vector<2x8x8xbf16>, vector<2x8x8xf32> -> vector<2x8x8xf32>
    "tpu.trace_stop"() : () -> ()
    %78 = vector.extract_strided_slice %55 {offsets = [0, 0, 8], sizes = [2, 8, 8], strides = [1, 1, 1]} : vector<2x8x32xbf16> to vector<2x8x8xbf16>
    %79 = vector.extract_strided_slice %57 {offsets = [0, 0, 8], sizes = [2, 8, 8], strides = [1, 1, 1]} : vector<2x8x32xbf16> to vector<2x8x8xbf16>
    "tpu.trace_start"() <{level = 10 : i32, message = "bqd,bkd->bqk"}> : () -> ()
    %cst_42 = arith.constant dense<0.000000e+00> : vector<2x8x8xf32>
    %80 = tpu.matmul %78, %79, %cst_42 {dimension_numbers = #tpu.dot_dimension_numbers<[2], [2], [1], [1], [0, 0, 0, 1, 1, 1], [0], [0]>} : vector<2x8x8xbf16>, vector<2x8x8xbf16>, vector<2x8x8xf32> -> vector<2x8x8xf32>
    "tpu.trace_stop"() : () -> ()
    %81 = vector.broadcast %5 : vector<2x1x8xf32> to vector<2x8x8xf32>
    %82 = arith.addf %80, %81 : vector<2x8x8xf32>
    %cst_43 = arith.constant dense<0xFF800000> : vector<2x8xf32>
    %83 = vector.multi_reduction <maximumf>, %82, %cst_43 [2] : vector<2x8x8xf32> to vector<2x8xf32>
    %84 = vector.shape_cast %83 : vector<2x8xf32> to vector<2x8x1xf32>
    %85 = vector.broadcast %84 : vector<2x8x1xf32> to vector<2x8x8xf32>
    %86 = arith.subf %82, %85 : vector<2x8x8xf32>
    %87 = math.exp %86 : vector<2x8x8xf32>
    %cst_44 = arith.constant dense<0.000000e+00> : vector<2x8xf32>
    %88 = vector.multi_reduction <add>, %87, %cst_44 [2] : vector<2x8x8xf32> to vector<2x8xf32>
    %89 = vector.shape_cast %88 : vector<2x8xf32> to vector<2x8x1xf32>
    %90 = tpu.reciprocal %89 {approx = true} : vector<2x8x1xf32> -> vector<2x8x1xf32>
    %91 = vector.broadcast %90 : vector<2x8x1xf32> to vector<2x8x8xf32>
    %92 = arith.mulf %87, %91 : vector<2x8x8xf32>
    %93 = arith.truncf %92 : vector<2x8x8xf32> to vector<2x8x8xbf16>
    %94 = vector.extract_strided_slice %59 {offsets = [0, 0, 8], sizes = [2, 8, 8], strides = [1, 1, 1]} : vector<2x8x32xbf16> to vector<2x8x8xbf16>
    "tpu.trace_start"() <{level = 10 : i32, message = "bqk,bkd->bqd"}> : () -> ()
    %cst_45 = arith.constant dense<0.000000e+00> : vector<2x8x8xf32>
    %95 = tpu.matmul %93, %94, %cst_45 {dimension_numbers = #tpu.dot_dimension_numbers<[2], [1], [1], [2], [0, 0, 0, 1, 1, 2], [0], [0]>} : vector<2x8x8xbf16>, vector<2x8x8xbf16>, vector<2x8x8xf32> -> vector<2x8x8xf32>
    "tpu.trace_stop"() : () -> ()
    %96 = vector.extract_strided_slice %55 {offsets = [0, 0, 16], sizes = [2, 8, 8], strides = [1, 1, 1]} : vector<2x8x32xbf16> to vector<2x8x8xbf16>
    %97 = vector.extract_strided_slice %57 {offsets = [0, 0, 16], sizes = [2, 8, 8], strides = [1, 1, 1]} : vector<2x8x32xbf16> to vector<2x8x8xbf16>
    "tpu.trace_start"() <{level = 10 : i32, message = "bqd,bkd->bqk"}> : () -> ()
    %cst_46 = arith.constant dense<0.000000e+00> : vector<2x8x8xf32>
    %98 = tpu.matmul %96, %97, %cst_46 {dimension_numbers = #tpu.dot_dimension_numbers<[2], [2], [1], [1], [0, 0, 0, 1, 1, 1], [0], [0]>} : vector<2x8x8xbf16>, vector<2x8x8xbf16>, vector<2x8x8xf32> -> vector<2x8x8xf32>
    "tpu.trace_stop"() : () -> ()
    %99 = vector.broadcast %5 : vector<2x1x8xf32> to vector<2x8x8xf32>
    %100 = arith.addf %98, %99 : vector<2x8x8xf32>
    %cst_47 = arith.constant dense<0xFF800000> : vector<2x8xf32>
    %101 = vector.multi_reduction <maximumf>, %100, %cst_47 [2] : vector<2x8x8xf32> to vector<2x8xf32>
    %102 = vector.shape_cast %101 : vector<2x8xf32> to vector<2x8x1xf32>
    %103 = vector.broadcast %102 : vector<2x8x1xf32> to vector<2x8x8xf32>
    %104 = arith.subf %100, %103 : vector<2x8x8xf32>
    %105 = math.exp %104 : vector<2x8x8xf32>
    %cst_48 = arith.constant dense<0.000000e+00> : vector<2x8xf32>
    %106 = vector.multi_reduction <add>, %105, %cst_48 [2] : vector<2x8x8xf32> to vector<2x8xf32>
    %107 = vector.shape_cast %106 : vector<2x8xf32> to vector<2x8x1xf32>
    %108 = tpu.reciprocal %107 {approx = true} : vector<2x8x1xf32> -> vector<2x8x1xf32>
    %109 = vector.broadcast %108 : vector<2x8x1xf32> to vector<2x8x8xf32>
    %110 = arith.mulf %105, %109 : vector<2x8x8xf32>
    %111 = arith.truncf %110 : vector<2x8x8xf32> to vector<2x8x8xbf16>
    %112 = vector.extract_strided_slice %59 {offsets = [0, 0, 16], sizes = [2, 8, 8], strides = [1, 1, 1]} : vector<2x8x32xbf16> to vector<2x8x8xbf16>
    "tpu.trace_start"() <{level = 10 : i32, message = "bqk,bkd->bqd"}> : () -> ()
    %cst_49 = arith.constant dense<0.000000e+00> : vector<2x8x8xf32>
    %113 = tpu.matmul %111, %112, %cst_49 {dimension_numbers = #tpu.dot_dimension_numbers<[2], [1], [1], [2], [0, 0, 0, 1, 1, 2], [0], [0]>} : vector<2x8x8xbf16>, vector<2x8x8xbf16>, vector<2x8x8xf32> -> vector<2x8x8xf32>
    "tpu.trace_stop"() : () -> ()
    %114 = vector.extract_strided_slice %55 {offsets = [0, 0, 24], sizes = [2, 8, 8], strides = [1, 1, 1]} : vector<2x8x32xbf16> to vector<2x8x8xbf16>
    %115 = vector.extract_strided_slice %57 {offsets = [0, 0, 24], sizes = [2, 8, 8], strides = [1, 1, 1]} : vector<2x8x32xbf16> to vector<2x8x8xbf16>
    "tpu.trace_start"() <{level = 10 : i32, message = "bqd,bkd->bqk"}> : () -> ()
    %cst_50 = arith.constant dense<0.000000e+00> : vector<2x8x8xf32>
    %116 = tpu.matmul %114, %115, %cst_50 {dimension_numbers = #tpu.dot_dimension_numbers<[2], [2], [1], [1], [0, 0, 0, 1, 1, 1], [0], [0]>} : vector<2x8x8xbf16>, vector<2x8x8xbf16>, vector<2x8x8xf32> -> vector<2x8x8xf32>
    "tpu.trace_stop"() : () -> ()
    %117 = vector.broadcast %5 : vector<2x1x8xf32> to vector<2x8x8xf32>
    %118 = arith.addf %116, %117 : vector<2x8x8xf32>
    %cst_51 = arith.constant dense<0xFF800000> : vector<2x8xf32>
    %119 = vector.multi_reduction <maximumf>, %118, %cst_51 [2] : vector<2x8x8xf32> to vector<2x8xf32>
    %120 = vector.shape_cast %119 : vector<2x8xf32> to vector<2x8x1xf32>
    %121 = vector.broadcast %120 : vector<2x8x1xf32> to vector<2x8x8xf32>
    %122 = arith.subf %118, %121 : vector<2x8x8xf32>
    %123 = math.exp %122 : vector<2x8x8xf32>
    %cst_52 = arith.constant dense<0.000000e+00> : vector<2x8xf32>
    %124 = vector.multi_reduction <add>, %123, %cst_52 [2] : vector<2x8x8xf32> to vector<2x8xf32>
    %125 = vector.shape_cast %124 : vector<2x8xf32> to vector<2x8x1xf32>
    %126 = tpu.reciprocal %125 {approx = true} : vector<2x8x1xf32> -> vector<2x8x1xf32>
    %127 = vector.broadcast %126 : vector<2x8x1xf32> to vector<2x8x8xf32>
    %128 = arith.mulf %123, %127 : vector<2x8x8xf32>
    %129 = arith.truncf %128 : vector<2x8x8xf32> to vector<2x8x8xbf16>
    %130 = vector.extract_strided_slice %59 {offsets = [0, 0, 24], sizes = [2, 8, 8], strides = [1, 1, 1]} : vector<2x8x32xbf16> to vector<2x8x8xbf16>
    "tpu.trace_start"() <{level = 10 : i32, message = "bqk,bkd->bqd"}> : () -> ()
    %cst_53 = arith.constant dense<0.000000e+00> : vector<2x8x8xf32>
    %131 = tpu.matmul %129, %130, %cst_53 {dimension_numbers = #tpu.dot_dimension_numbers<[2], [1], [1], [2], [0, 0, 0, 1, 1, 2], [0], [0]>} : vector<2x8x8xbf16>, vector<2x8x8xbf16>, vector<2x8x8xf32> -> vector<2x8x8xf32>
    "tpu.trace_stop"() : () -> ()
    %132 = tpu.concatenate %77, %95, %113, %131 in 2 : vector<2x8x8xf32>, vector<2x8x8xf32>, vector<2x8x8xf32>, vector<2x8x8xf32> -> vector<2x8x32xf32>
    %133 = vector.shape_cast %132 : vector<2x8x32xf32> to vector<16x32xf32>
    %134 = arith.truncf %133 : vector<16x32xf32> to vector<16x32xbf16>
    %c0_54 = arith.constant 0 : index
    %c0_55 = arith.constant 0 : index
    %c0_56 = arith.constant 0 : index
    %135 = vector.load %arg12[%c0_54, %c0_55, %c0_56] : memref<1x32x32xbf16, #tpu.memory_space<vmem>>, vector<1x32x32xbf16>
    %136 = vector.shape_cast %135 : vector<1x32x32xbf16> to vector<32x32xbf16>
    %cst_57 = arith.constant dense<0.000000e+00> : vector<16x32xf32>
    %137 = tpu.matmul %134, %136, %cst_57 {dimension_numbers = #tpu.dot_dimension_numbers<[1], [0], [0], [1], [0, 0, 1, 1], [], []>} : vector<16x32xbf16>, vector<32x32xbf16>, vector<16x32xf32> -> vector<16x32xf32>
    %c0_58 = arith.constant 0 : index
    %c0_59 = arith.constant 0 : index
    %c0_60 = arith.constant 0 : index
    %138 = vector.load %arg13[%c0_58, %c0_59, %c0_60] : memref<1x1x32xf32, #tpu.memory_space<vmem>>, vector<1x1x32xf32>
    %139 = vector.shape_cast %138 : vector<1x1x32xf32> to vector<1x32xf32>
    %140 = vector.broadcast %139 : vector<1x32xf32> to vector<16x32xf32>
    %141 = arith.addf %137, %140 : vector<16x32xf32>
    %142 = arith.addf %4, %141 : vector<16x32xf32>
    %c0_61 = arith.constant 0 : index
    %c0_62 = arith.constant 0 : index
    %c0_63 = arith.constant 0 : index
    %143 = vector.load %arg14[%c0_61, %c0_62, %c0_63] : memref<1x1x32xf32, #tpu.memory_space<vmem>>, vector<1x1x32xf32>
    %144 = vector.shape_cast %143 : vector<1x1x32xf32> to vector<1x32xf32>
    %c0_64 = arith.constant 0 : index
    %c0_65 = arith.constant 0 : index
    %c0_66 = arith.constant 0 : index
    %145 = vector.load %arg15[%c0_64, %c0_65, %c0_66] : memref<1x1x32xf32, #tpu.memory_space<vmem>>, vector<1x1x32xf32>
    %146 = vector.shape_cast %145 : vector<1x1x32xf32> to vector<1x32xf32>
    %cst_67 = arith.constant dense<0.000000e+00> : vector<16xf32>
    %147 = vector.multi_reduction <add>, %142, %cst_67 [1] : vector<16x32xf32> to vector<16xf32>
    %148 = vector.shape_cast %147 : vector<16xf32> to vector<16x1xf32>
    %cst_68 = arith.constant 3.200000e+01 : f32
    %149 = vector.broadcast %cst_68 : f32 to vector<16x1xf32>
    %150 = arith.divf %148, %149 : vector<16x1xf32>
    %151 = vector.broadcast %150 : vector<16x1xf32> to vector<16x32xf32>
    %152 = arith.subf %142, %151 : vector<16x32xf32>
    %153 = arith.mulf %152, %152 : vector<16x32xf32>
    %cst_69 = arith.constant dense<0.000000e+00> : vector<16xf32>
    %154 = vector.multi_reduction <add>, %153, %cst_69 [1] : vector<16x32xf32> to vector<16xf32>
    %155 = vector.shape_cast %154 : vector<16xf32> to vector<16x1xf32>
    %cst_70 = arith.constant 3.200000e+01 : f32
    %156 = vector.broadcast %cst_70 : f32 to vector<16x1xf32>
    %157 = arith.divf %155, %156 : vector<16x1xf32>
    %cst_71 = arith.constant 9.99999974E-6 : f32
    %158 = vector.broadcast %cst_71 : f32 to vector<16x1xf32>
    %159 = arith.addf %157, %158 : vector<16x1xf32>
    %160 = math.rsqrt %159 : vector<16x1xf32>
    %161 = vector.broadcast %160 : vector<16x1xf32> to vector<16x32xf32>
    %162 = arith.mulf %152, %161 : vector<16x32xf32>
    %163 = vector.broadcast %144 : vector<1x32xf32> to vector<16x32xf32>
    %164 = arith.mulf %162, %163 : vector<16x32xf32>
    %165 = vector.broadcast %146 : vector<1x32xf32> to vector<16x32xf32>
    %166 = arith.addf %164, %165 : vector<16x32xf32>
    %167 = arith.truncf %166 : vector<16x32xf32> to vector<16x32xbf16>
    %c0_72 = arith.constant 0 : index
    %c0_73 = arith.constant 0 : index
    %c0_74 = arith.constant 0 : index
    %168 = vector.load %arg16[%c0_72, %c0_73, %c0_74] : memref<1x32x128xbf16, #tpu.memory_space<vmem>>, vector<1x32x128xbf16>
    %169 = vector.shape_cast %168 : vector<1x32x128xbf16> to vector<32x128xbf16>
    %cst_75 = arith.constant dense<0.000000e+00> : vector<16x128xf32>
    %170 = tpu.matmul %167, %169, %cst_75 {dimension_numbers = #tpu.dot_dimension_numbers<[1], [0], [0], [1], [0, 0, 1, 1], [], []>} : vector<16x32xbf16>, vector<32x128xbf16>, vector<16x128xf32> -> vector<16x128xf32>
    %c0_76 = arith.constant 0 : index
    %c0_77 = arith.constant 0 : index
    %c0_78 = arith.constant 0 : index
    %171 = vector.load %arg17[%c0_76, %c0_77, %c0_78] : memref<1x1x128xf32, #tpu.memory_space<vmem>>, vector<1x1x128xf32>
    %172 = vector.shape_cast %171 : vector<1x1x128xf32> to vector<1x128xf32>
    %173 = vector.broadcast %172 : vector<1x128xf32> to vector<16x128xf32>
    %174 = arith.addf %170, %173 : vector<16x128xf32>
    %cst_79 = arith.constant -1.702000e+00 : f32
    %175 = vector.broadcast %cst_79 : f32 to vector<16x128xf32>
    %176 = arith.mulf %175, %174 : vector<16x128xf32>
    %177 = math.exp %176 : vector<16x128xf32>
    %cst_80 = arith.constant 1.000000e+00 : f32
    %178 = vector.broadcast %cst_80 : f32 to vector<16x128xf32>
    %179 = arith.addf %178, %177 : vector<16x128xf32>
    %180 = arith.divf %174, %179 : vector<16x128xf32>
    %181 = arith.truncf %180 : vector<16x128xf32> to vector<16x128xbf16>
    %c0_81 = arith.constant 0 : index
    %c0_82 = arith.constant 0 : index
    %c0_83 = arith.constant 0 : index
    %182 = vector.load %arg18[%c0_81, %c0_82, %c0_83] : memref<1x128x32xbf16, #tpu.memory_space<vmem>>, vector<1x128x32xbf16>
    %183 = vector.shape_cast %182 : vector<1x128x32xbf16> to vector<128x32xbf16>
    %cst_84 = arith.constant dense<0.000000e+00> : vector<16x32xf32>
    %184 = tpu.matmul %181, %183, %cst_84 {dimension_numbers = #tpu.dot_dimension_numbers<[1], [0], [0], [1], [0, 0, 1, 1], [], []>} : vector<16x128xbf16>, vector<128x32xbf16>, vector<16x32xf32> -> vector<16x32xf32>
    %c0_85 = arith.constant 0 : index
    %c0_86 = arith.constant 0 : index
    %c0_87 = arith.constant 0 : index
    %185 = vector.load %arg19[%c0_85, %c0_86, %c0_87] : memref<1x1x32xf32, #tpu.memory_space<vmem>>, vector<1x1x32xf32>
    %186 = vector.shape_cast %185 : vector<1x1x32xf32> to vector<1x32xf32>
    %187 = vector.broadcast %186 : vector<1x32xf32> to vector<16x32xf32>
    %188 = arith.addf %184, %187 : vector<16x32xf32>
    %189 = arith.addf %142, %188 : vector<16x32xf32>
    %190 = vector.shape_cast %189 : vector<16x32xf32> to vector<2x8x32xf32>
    %c0_88 = arith.constant 0 : index
    %c0_89 = arith.constant 0 : index
    %c0_90 = arith.constant 0 : index
    %191 = vector.load %arg20[%c0_88, %c0_89, %c0_90] : memref<2x8x32xf32, #tpu.memory_space<vmem>>, vector<2x8x32xf32>
    tpu.vector_store %arg20[%c0_88, %c0_89, %c0_90], %190 {strides = array<i32>} : memref<2x8x32xf32, #tpu.memory_space<vmem>>, vector<2x8x32xf32>,
    return
  }
  func.func @transform_0(%arg0: i32, %arg1: i32) -> (i32, i32, i32) {
    %c0_i32 = arith.constant 0 : i32
    %c0_i32_0 = arith.constant 0 : i32
    %c0_i32_1 = arith.constant 0 : i32
    return %arg0, %c0_i32, %c0_i32_0 : i32, i32, i32
  }
  func.func @transform_1(%arg0: i32, %arg1: i32) -> (i32, i32, i32) {
    %c0_i32 = arith.constant 0 : i32
    %c0_i32_0 = arith.constant 0 : i32
    %c0_i32_1 = arith.constant 0 : i32
    return %arg0, %c0_i32, %c0_i32_0 : i32, i32, i32
  }
  func.func @transform_2(%arg0: i32, %arg1: i32) -> (i32, i32, i32) {
    %c0_i32 = arith.constant 0 : i32
    %c0_i32_0 = arith.constant 0 : i32
    %c0_i32_1 = arith.constant 0 : i32
    return %arg1, %c0_i32, %c0_i32_0 : i32, i32, i32
  }
  func.func @transform_3(%arg0: i32, %arg1: i32) -> (i32, i32, i32) {
    %c0_i32 = arith.constant 0 : i32
    %c0_i32_0 = arith.constant 0 : i32
    %c0_i32_1 = arith.constant 0 : i32
    return %arg1, %c0_i32, %c0_i32_0 : i32, i32, i32
  }
  func.func @transform_4(%arg0: i32, %arg1: i32) -> (i32, i32, i32) {
    %c0_i32 = arith.constant 0 : i32
    %c0_i32_0 = arith.constant 0 : i32
    %c0_i32_1 = arith.constant 0 : i32
    return %arg1, %c0_i32, %c0_i32_0 : i32, i32, i32
  }
  func.func @transform_5(%arg0: i32, %arg1: i32) -> (i32, i32, i32) {
    %c0_i32 = arith.constant 0 : i32
    %c0_i32_0 = arith.constant 0 : i32
    %c0_i32_1 = arith.constant 0 : i32
    return %arg1, %c0_i32, %c0_i32_0 : i32, i32, i32
  }
  func.func @transform_6(%arg0: i32, %arg1: i32) -> (i32, i32, i32) {
    %c0_i32 = arith.constant 0 : i32
    %c0_i32_0 = arith.constant 0 : i32
    %c0_i32_1 = arith.constant 0 : i32
    return %arg1, %c0_i32, %c0_i32_0 : i32, i32, i32
  }
  func.func @transform_7(%arg0: i32, %arg1: i32) -> (i32, i32, i32) {
    %c0_i32 = arith.constant 0 : i32
    %c0_i32_0 = arith.constant 0 : i32
    %c0_i32_1 = arith.constant 0 : i32
    return %arg1, %c0_i32, %c0_i32_0 : i32, i32, i32
  }
  func.func @transform_8(%arg0: i32, %arg1: i32) -> (i32, i32, i32) {
    %c0_i32 = arith.constant 0 : i32
    %c0_i32_0 = arith.constant 0 : i32
    %c0_i32_1 = arith.constant 0 : i32
    return %arg1, %c0_i32, %c0_i32_0 : i32, i32, i32
  }
  func.func @transform_9(%arg0: i32, %arg1: i32) -> (i32, i32, i32) {
    %c0_i32 = arith.constant 0 : i32
    %c0_i32_0 = arith.constant 0 : i32
    %c0_i32_1 = arith.constant 0 : i32
    return %arg1, %c0_i32, %c0_i32_0 : i32, i32, i32
  }
  func.func @transform_10(%arg0: i32, %arg1: i32) -> (i32, i32, i32) {
    %c0_i32 = arith.constant 0 : i32
    %c0_i32_0 = arith.constant 0 : i32
    %c0_i32_1 = arith.constant 0 : i32
    return %arg1, %c0_i32, %c0_i32_0 : i32, i32, i32
  }
  func.func @transform_11(%arg0: i32, %arg1: i32) -> (i32, i32, i32) {
    %c0_i32 = arith.constant 0 : i32
    %c0_i32_0 = arith.constant 0 : i32
    %c0_i32_1 = arith.constant 0 : i32
    return %arg1, %c0_i32, %c0_i32_0 : i32, i32, i32
  }
  func.func @transform_12(%arg0: i32, %arg1: i32) -> (i32, i32, i32) {
    %c0_i32 = arith.constant 0 : i32
    %c0_i32_0 = arith.constant 0 : i32
    %c0_i32_1 = arith.constant 0 : i32
    return %arg1, %c0_i32, %c0_i32_0 : i32, i32, i32
  }
  func.func @transform_13(%arg0: i32, %arg1: i32) -> (i32, i32, i32) {
    %c0_i32 = arith.constant 0 : i32
    %c0_i32_0 = arith.constant 0 : i32
    %c0_i32_1 = arith.constant 0 : i32
    return %arg1, %c0_i32, %c0_i32_0 : i32, i32, i32
  }
  func.func @transform_14(%arg0: i32, %arg1: i32) -> (i32, i32, i32) {
    %c0_i32 = arith.constant 0 : i32
    %c0_i32_0 = arith.constant 0 : i32
    %c0_i32_1 = arith.constant 0 : i32
    return %arg1, %c0_i32, %c0_i32_0 : i32, i32, i32
  }
  func.func @transform_15(%arg0: i32, %arg1: i32) -> (i32, i32, i32) {
    %c0_i32 = arith.constant 0 : i32
    %c0_i32_0 = arith.constant 0 : i32
    %c0_i32_1 = arith.constant 0 : i32
    return %arg1, %c0_i32, %c0_i32_0 : i32, i32, i32
  }
  func.func @transform_16(%arg0: i32, %arg1: i32) -> (i32, i32, i32) {
    %c0_i32 = arith.constant 0 : i32
    %c0_i32_0 = arith.constant 0 : i32
    %c0_i32_1 = arith.constant 0 : i32
    return %arg1, %c0_i32, %c0_i32_0 : i32, i32, i32
  }
  func.func @transform_17(%arg0: i32, %arg1: i32) -> (i32, i32, i32) {
    %c0_i32 = arith.constant 0 : i32
    %c0_i32_0 = arith.constant 0 : i32
    %c0_i32_1 = arith.constant 0 : i32
    return %arg1, %c0_i32, %c0_i32_0 : i32, i32, i32
  }
  func.func @transform_18(%arg0: i32, %arg1: i32) -> (i32, i32, i32) {
    %c0_i32 = arith.constant 0 : i32
    %c0_i32_0 = arith.constant 0 : i32
    %c0_i32_1 = arith.constant 0 : i32
    return %arg0, %c0_i32, %c0_i32_0 : i32, i32, i32
  }
}

</mosaic_0001>

<bundles_post_ra>
// kernel: tpu_custom_call.1
= control target key start
LH: loop header
LB: loop body
LE: loop exit
PB: predicated region body
PF: predicated region fallthrough
CT: control target
= control target key end

     0   :  { %s3748_s0 = inlined_call_operand.hbm [shape: f32[2,8,32], index: 0, kind: input, shape index: {}]   ;;  %s3749_s1 = inlined_call_operand.hbm [shape: f32[2,1,8], index: 1, kind: input, shape index: {}]   ;;  %s3750_s2 = inlined_call_operand.vmem [shape: f32[2,1,32], index: 2, kind: input, shape index: {}]   ;;  %s3751_s3 = inlined_call_operand.vmem [shape: f32[2,1,32], index: 3, kind: input, shape index: {}]   ;;  %s3752_s4 = inlined_call_operand.vmem [shape: bf16[2,32,32], index: 4, kind: input, shape index: {}]   ;;  %s3753_s5 = inlined_call_operand.vmem [shape: f32[2,1,32], index: 5, kind: input, shape index: {}]   ;;  %s3754_s6 = inlined_call_operand.vmem [shape: bf16[2,32,32], index: 6, kind: input, shape index: {}]   ;;  %s3755_s7 = inlined_call_operand.vmem [shape: f32[2,1,32], index: 7, kind: input, shape index: {}]   ;;  %s3756_s8 = inlined_call_operand.vmem [shape: bf16[2,32,32], index: 8, kind: input, shape index: {}]   ;;  %s3757_s9 = inlined_call_operand.vmem [shape: f32[2,1,32], index: 9, kind: input, shape index: {}]   ;;  %s3758_s10 = inlined_call_operand.vmem [shape: bf16[2,32,32], index: 10, kind: input, shape index: {}]   ;;  %s3759_s11 = inlined_call_operand.vmem [shape: f32[2,1,32], index: 11, kind: input, shape index: {}]   ;;  %s3760_s12 = inlined_call_operand.vmem [shape: f32[2,1,32], index: 12, kind: input, shape index: {}]   ;;  %s3761_s13 = inlined_call_operand.vmem [shape: f32[2,1,32], index: 13, kind: input, shape index: {}]   ;;  %s3762_s14 = inlined_call_operand.vmem [shape: bf16[2,32,128], index: 14, kind: input, shape index: {}]   ;;  %s3763_s15 = inlined_call_operand.vmem [shape: f32[2,1,128], index: 15, kind: input, shape index: {}]   ;;  %s3764_s16 = inlined_call_operand.vmem [shape: bf16[2,128,32], index: 16, kind: input, shape index: {}]   ;;  %s3765_s17 = inlined_call_operand.vmem [shape: f32[2,1,32], index: 17, kind: input, shape index: {}]   ;;  %s3766_s18 = inlined_call_operand.hbm [shape: f32[2,8,32], index: 18, kind: output, shape index: {}]  }
   0x1   :  { %3770 = sst [smem:[#allocation14_spill]] %s3748_s0 }
   0x2   :  { %3771 = sst [smem:[#allocation15_spill]] %s3749_s1 }
   0x3   :  { %3772 = sst [smem:[#allocation16_spill]] %s3750_s2 }
   0x4   :  { %3773 = sst [smem:[#allocation17_spill]] %s3751_s3 }
   0x5   :  { %3774 = sst [smem:[#allocation18_spill]] %s3752_s4 }
   0x6   :  { %3775 = sst [smem:[#allocation19_spill]] %s3753_s5 }
   0x7   :  { %3776 = sst [smem:[#allocation20_spill]] %s3754_s6 }
   0x8   :  { %3777 = sst [smem:[#allocation21_spill]] %s3756_s8 }
   0x9   :  { %3778 = sst [smem:[#allocation22_spill]] %s3758_s10 }
   0xa   :  { %3779 = sst [smem:[#allocation23_spill]] %s3765_s17 }
   0xb   :  { %3780 = sst [smem:[#allocation24_spill]] %s3766_s18 }
   0xc   :  { %23 = vsyncpa [#allocation3], 0 }
   0xd   :  { %24 = vsyncpa [#allocation6], 0 }
   0xe   :  { %25 = vsyncpa [#allocation4], 0  ;;  %s3264_s27 = smov 0   ;;  %s3266_s28 = smov 0  }
   0xf   :  { %s3268_s29 = smov 0  }
  0x10 LB: > { %3781 = sst [smem:[#allocation11_spill]] %s3147_s28  ;;  %s3767_s30 = sadd.s32 4294967295, %s3151_s29   ;;  %s3151_s29 = sphi %s3268_s29, %s31_s29   ;;  %s3147_s28 = sphi %s3266_s28, %s3814_s28   ;;  %s3143_s27 = sphi %s3264_s27, %s3813_s27  }
  0x11   : > { %3782 = sst [smem:[#allocation12_spill]] %s3151_s29  ;;  %s40_s0 = sadd.s32 1, %s3147_s28 }
  0x12   : > { %p41_p0 = scmp.ge.s32.totalorder %s40_s0, 2  ;;  %p2602_p1 = scmp.ge.s32.totalorder %s3151_s29, 1 }
  0x13   : > { %p542_p2 = scmp.lt.s32.totalorder %s3151_s29, 3  ;;  %p3291_p4 = scmp.eq.s32.totalorder %s3767_s30, 0 }
  0x14   : > { %s3816_s0 = smov (%p41_p0, %s40_s0), 0  ;;  %s3153_s20 = smov [#allocation2]  }
  0x15   : > { %3783 = sst [smem:[#allocation13_spill]] %s3816_s0  ;;  %p3285_p3 = pnand %p2602_p1, %p542_p2 }
  0x16   : > { %s557_s21 = sshll.u32 %s3153_s20, 4  ;;  %s3154_s2 = smov [#allocation5]   ;;  %s558_s21 = int_to_ptr.vmem [resolvable:$true] %s557_s21 }
  0x17   : > { %p2907_p5 = pneg %p3285_p3  ;;  %s573_s23 = sshll.u32 %s3154_s2, 4  ;;  %s574_s23 = int_to_ptr.vmem [resolvable:$true] %s573_s23 }
  0x18   : > { %s3052_s24 = scalar_lea.vmem %s558_s21, 256  ;;  %p3060_p11 = scmp.lt.s32.totalorder %s558_s21, %s558_s21 }
  0x19   : > { %p3299_p6 = pnand %p3291_p4, %p2907_p5  ;;  %p3053_p8 = scmp.ne.s32.totalorder %s558_s21, %s3052_s24 }
  0x1a   : > { %p3061_p12 = scmp.lt.s32.totalorder %s3052_s24, %s3052_s24 }
  0x1b   : > { %p3043_p7 = pneg %p3299_p6 }
  0x1c   : > { %p3062_p13 = por %p3061_p12, %p3060_p11 }
  0x1d   : > { %p3055_p9 = pnand %p3053_p8, %p3043_p7 }
  0x1f   : > { %p3056_p10 = pneg %p3055_p9 }
  0x21   : > { %p3063_p0 = pnand %p3062_p13, %p3056_p10 }
  0x23   : > { %3066 = shalt.err (!%p3063_p0)
}
  0x24   : > { %s3155_s25 = smov 128   ;;  %s3156_s26 = smov 8  }
  0x25   : > { %s3787_s30 = sld [smem:[#allocation14_spill]]  ;;  %s3078_s0 = scalar_lea.vmem %s574_s23, 32 }
  0x26   : > { %p3079_p1 = scmp.ne.s32.totalorder %s574_s23, %s3078_s0  ;;  %p3086_p8 = scmp.lt.s32.totalorder %s574_s23, %s574_s23 }
  0x27   : > { %p3087_p9 = scmp.lt.s32.totalorder %s3078_s0, %s3078_s0 }
  0x28   : > { %p3081_p2 = pnand %p3079_p1, %p3043_p7 }
  0x29   : > { %p3088_p11 = por %p3087_p9, %p3086_p8 }
  0x2a   : > { %p3082_p5 = pneg %p3081_p2 }
  0x2b   : > { %2910 = dma.hbm_to_vmem [thread:$0]  (!%p3299_p6), %s3787_s30, 256, %s558_s21, [#allocation3], %s3155_s25, %s3155_s25, %s3156_s26  }
  0x2c   : > { %p3089_p10 = pnand %p3088_p11, %p3082_p5 }
  0x2e   : > { %3092 = shalt.err (!%p3089_p10)
}
  0x2f   : > { %s3157_s24 = smov 16   ;;  %s3158_s28 = smov 1  }
  0x30   : > { %s3788_s17 = sld [smem:[#allocation15_spill]] }
  0x32   : > { %697 = sbr.rel (%p3285_p3) target bundleno = 3946 (0xf6a), region = 92 }
  0x36   : > { %2913 = dma.hbm_to_vmem [thread:$0]  (!%p3299_p6), %s3788_s17, 32, %s574_s23, [#allocation6], %s3157_s24, %s3157_s24, %s3158_s28  }
  0x37   : > { %3130 = dma.done.wait (%p3291_p4), [#allocation3], 256  }
  0x38   : > { %3132 = vsyncadd (%p3291_p4), [#allocation3], 4294967040 }
  0x39   : > { %3134 = dma.done.wait (%p3291_p4), [#allocation6], 32  }
  0x3a   : > { %3136 = vsyncadd (%p3291_p4), [#allocation6], 4294967264  ;;  %p807_p7 = scmp.lt.s32.totalorder %s3143_s27, 1  ;;  %s3792_s4 = sld [smem:[#allocation18_spill]] }
  0x3b   : > { %s3793_s6 = sld [smem:[#allocation20_spill]]  ;;  %p2621_p3 = scmp.ne.s32.totalorder %s3143_s27, 0 }
  0x3c   : > { %s3333_s18 = scalar_select %p807_p7, %s3143_s27, 1 }
  0x3d   : > { %s3794_s8 = sld [smem:[#allocation21_spill]] }
  0x3e   : > { %s2677_s21 = sshll.u32 %s3333_s18, 4  ;;  %s3795_s10 = sld [smem:[#allocation22_spill]] }
  0x3f   : > { %s3391_s23 = scalar_lea.vmem %s3762_s14, %s2677_s21  ;;  %s858_s26 = scalar_lea.vmem %s3763_s15, %s3333_s18 }
  0x40   : > { %s3351_s2 = scalar_lea.vmem %s3792_s4, %s2677_s21  ;;  %s3796_s0 = sld [smem:[#allocation23_spill]] }
  0x41   : > { %s3356_s28 = scalar_lea.vmem %s3793_s6, %s2677_s21 }
  0x42   : > { %872 = sbr.rel (%p2621_p3) target bundleno = 73 (0x49), region = 104 }
  0x43   : > { %s3365_s3 = scalar_lea.vmem %s3794_s8, %s2677_s21  ;;  %s850_s8 = scalar_lea.vmem %s3761_s13, %s3333_s18 }
  0x44   : > { %s3374_s4 = scalar_lea.vmem %s3795_s10, %s2677_s21  ;;  %s2682_s10 = sshll.u32 %s3333_s18, 6 }
  0x45   : > { %s3401_s6 = scalar_lea.vmem %s3764_s16, %s2682_s10 }
  0x46   : > { %s866_s1 = scalar_lea.vmem %s3796_s0, %s3333_s18 }
  0x47   : > { %v873_v0 = vld [vmem:[#allocation2] sm:$0xff]  ;;  %vm875_vm0 = vcmask 261120   ;;  %v874_v1 = vld [vmem:[#allocation2 + $0x8] sm:$0xff] }
  0x48   : > { %876 = vst.msk [vmem:[#allocation7] sm:$0xff] %vm875_vm0, %v873_v0  ;;  %877 = vst.msk [vmem:[#allocation7 + $0x8] sm:$0xff] %vm875_vm0, %v874_v1 }
  0x49 PF: > { %vm884_vm1 = vcmask 261120   ;;  %v2975_v16 = vld [vmem:[%s3351_s2 + $0x8] sm:$0xff]   ;;  %v3159_v17 = vmov 0.0   ;;  %vm3160_vm2 = vmmov 0   ;;  %v2976_v18 = vld [vmem:[%s3351_s2] sm:$0xff]   ;;  %s3797_s27 = sld [smem:[#allocation16_spill]]  ;;  %s3801_s25 = scalar_lea.vmem %s3755_s7, %s3333_s18 }
  0x4a   : > { %2739 = vmatprep.subr.bf16.mxu0 %v3159_v17  ;;  %2743 = vmatprep.mubr.msk.bf16.mxu0 %vm3160_vm2, %v3159_v17  ;;  %s3799_s19 = sld [smem:[#allocation17_spill]]  ;;  %v2977_v35 = vld [vmem:[%s3356_s28 + $0x8] sm:$0xff]   ;;  %v2978_v37 = vld [vmem:[%s3356_s28] sm:$0xff]   ;;  %vm1144_vm3 = vcmask 64512   ;;  %s3804_s10 = scalar_lea.vmem %s3757_s9, %s3333_s18  ;;  %vm1264_vm4 = vcmask 1043456   ;;  %vm2046_vm5 = vcmask 130048  }
  0x4b   : > { %2740 = vmatpush3.bf16.msra.mxu0 %v2975_v16  ;;  %2763 = vmatprep.subr.bf16.mxu1 %v3159_v17  ;;  %v2979_v38 = vld [vmem:[%s3365_s3 + $0x8] sm:$0xff]   ;;  %v2980_v39 = vld [vmem:[%s3365_s3] sm:$0xff]   ;;  %s3802_s17 = sld [smem:[#allocation19_spill]]  ;;  %s3163_s2 = smov 104   ;;  %vm2049_vm6 = vcmask 195584  }
  0x4c   : > { %2741 = vmatprep.subr.bf16.mxu0 %v3159_v17  ;;  %2765 = vmatprep.mubr.msk.bf16.mxu1 %vm3160_vm2, %v3159_v17  ;;  %v2628_v44 = vld [vmem:[%s3801_s25] ss:$0 sm:$0xff]  ;;  %s3164_s0 = smov 8   ;;  %s3805_s3 = scalar_lea.vmem %s3759_s11, %s3333_s18 }
  0x4d   : > { %v2632_v55 = vld [vmem:[%s3804_s10] ss:$0 sm:$0xff]  ;;  %s3167_s10 = smov [#allocation7]  }
  0x4f   : > { %v3408_v2 = vld [vmem:[#allocation7] sm:$0xff]  ;;  %v3410_v3 = vld [vmem:[#allocation7 + $0x8] sm:$0xff]  ;;  %2742 = vmatpush3.bf16.msra.mxu0 %v2976_v18  ;;  %s3798_s21 = scalar_lea.vmem %s3797_s27, %s3333_s18  ;;  %s3161_s27 = smov 120  }
  0x50   : > { %v885_v4 = vsel %vm884_vm1, %v3408_v2, 0.0  ;;  %v888_v5 = vsel %vm884_vm1, %v3410_v3, 0.0  ;;  %2747 = vmatprep.subr.bf16.mxu0 %v3159_v17  ;;  %v2622_v27 = vld [vmem:[%s3798_s21] ss:$0 sm:$0xff]  ;;  %s3800_s22 = scalar_lea.vmem %s3799_s19, %s3333_s18  ;;  %s3162_s21 = smov 112  }
  0x51   : > { %886 = vadd.xlane.f32.xlu0 %v885_v4  ;;  %v2623_v31 = vld [vmem:[%s3800_s22] ss:$0 sm:$0xff]  ;;  %s3803_s30 = scalar_lea.vmem %s3802_s17, %s3333_s18  ;;  %s3165_s19 = smov 16  }
  0x52   : > { %v2624_v45 = vld [vmem:[%s3803_s30] ss:$0 sm:$0xff]  ;;  %s3166_s22 = smov 24  }
  0x55   : > { %889 = vadd.xlane.f32.xlu0 %v888_v5 }
  0xda   : > { %v887_v6 = vpop.xlane.xlu0 %886 }
  0xdb   : > { %v892_v7 = vmul.f32 0.03125, %v887_v6 }
  0xdd   : > { %v894_v8 = vsub.f32 %v3408_v2, %v892_v7 }
  0xde   : > { %v890_v9 = vpop.xlane.xlu0 %889 }
  0xdf   : > { %v893_v10 = vmul.f32 0.03125, %v890_v9  ;;  %v896_v11 = vmul.f32 %v894_v8, %v894_v8 }
  0xe1   : > { %v895_v12 = vsub.f32 %v3410_v3, %v893_v10  ;;  %v898_v13 = vsel %vm884_vm1, %v896_v11, 0.0  ;;  %v3504_v11 = vld [vmem:[#allocation5] ss:$0 sm:$0xff] }
  0xe2   : > { %899 = vadd.xlane.f32.xlu1 %v898_v13 }
  0xe3   : > { %v897_v14 = vmul.f32 %v895_v12, %v895_v12 }
  0xe5   : > { %v901_v15 = vsel %vm884_vm1, %v897_v14, 0.0 }
  0xe6   : > { %902 = vadd.xlane.f32.xlu1 %v901_v15  ;;  %v3507_v15 = vld [vmem:[#allocation5 + $0x1] ss:$0 sm:$0xff] }
 0x16b   : > { %v900_v19 = vpop.xlane.xlu1 %899 }
 0x16c   : > { %v904_v20 = vmul.f32 0.03125, %v900_v19 }
 0x16e   : > { %v906_v21 = vadd.f32 1e-05, %v904_v20 }
 0x16f   : > { %v903_v22 = vpop.xlane.xlu1 %902 }
 0x170   : > { %2993 = vrsqrt.f32 %v906_v21  ;;  %v905_v23 = vmul.f32 0.03125, %v903_v22 }
 0x172   : > { %v907_v24 = vadd.f32 1e-05, %v905_v23 }
 0x174   : > { %2995 = vrsqrt.f32 %v907_v24 }
 0x17d   : > { %v2994_v25 = vpop.eup %2993 }
 0x17e   : > { %v910_v26 = vmul.f32 %v2994_v25, %v894_v8 }
 0x180   : > { %v918_v30 = vmul.f32 %v2622_v27, %v910_v26 }
 0x181   : > { %v2996_v28 = vpop.eup %2995 }
 0x182   : > { %v911_v29 = vmul.f32 %v2996_v28, %v895_v12  ;;  %v926_v33 = vadd.f32 %v2623_v31, %v918_v30 }
 0x184   : > { %v919_v32 = vmul.f32 %v2622_v27, %v911_v29 }
 0x186   : > { %v927_v34 = vadd.f32 %v2623_v31, %v919_v32 }
 0x188   : > { %v928_v36 = vpack.c.bf16 %v927_v34, %v926_v33 }
 0x18a   : > { %2744 = vmatmul.mubr.msk.bf16.vlgmr.msra.gmra.mxu0 %vm884_vm1, %v928_v36 }
 0x18b   : > { %2748 = vmatpush3.bf16.msra.mxu0 %v2977_v35  ;;  %2751 = vmatprep.mubr.msk.bf16.mxu0 %vm3160_vm2, %v3159_v17 }
 0x18c   : > { %2749 = vmatprep.subr.bf16.mxu0 %v3159_v17 }
 0x18f   : > { %2750 = vmatpush3.bf16.msra.mxu0 %v2978_v37 }
 0x190   : > { %2755 = vmatprep.subr.bf16.mxu0 %v3159_v17 }
 0x192   : > { %2752 = vmatmul.mubr.msk.bf16.vlgmr.msra.gmra.mxu0 %vm884_vm1, %v928_v36 }
 0x193   : > { %2756 = vmatpush3.bf16.msra.mxu0 %v2979_v38  ;;  %2759 = vmatprep.mubr.msk.bf16.mxu0 %vm3160_vm2, %v3159_v17 }
 0x194   : > { %2757 = vmatprep.subr.bf16.mxu0 %v3159_v17 }
 0x197   : > { %2758 = vmatpush3.bf16.msra.mxu0 %v2980_v39 }
 0x198   : > { %2769 = vmatprep.subr.bf16.mxu0 %v3159_v17 }
 0x19a   : > { %2760 = vmatmul.mubr.msk.bf16.vlgmr.msra.gmra.mxu0 %vm884_vm1, %v928_v36 }
 0x19b   : > { %2771 = vmatprep.mubr.msk.bf16.mxu0 %vm3160_vm2, %v3159_v17 }
 0x24a   : > { %v989_v40 = vpop.f32.mrf.mxu0 }
 0x24b   : > { %v990_v49 = vadd.f32 %v2624_v45, %v989_v40 }
 0x24c   : > { %v2745_v41 = vpop.f32.mrf.mxu0 }
 0x24d   : > { %v996_v56 = vmul.f32 0.35355338, %v990_v49 }
 0x24e   : > { %v992_v42 = vpop.f32.mrf.mxu0 }
 0x24f   : > { %v993_v57 = vadd.f32 %v2624_v45, %v992_v42  ;;  %v3481_v63 = vpack.c.bf16 %v996_v56, %v996_v56 }
 0x250   : > { %v2746_v43 = vpop.f32.mrf.mxu0 }
 0x251   : > { %v997_v0 = vmul.f32 0.35355338, %v993_v57 }
 0x252   : > { %v1055_v46 = vpop.f32.mrf.mxu0 }
 0x253   : > { %v1056_v47 = vadd.f32 %v2628_v44, %v1055_v46  ;;  %v3492_v8 = vpack.c.bf16 %v997_v0, %v997_v0 }
 0x254   : > { %v2753_v48 = vpop.f32.mrf.mxu0 }
 0x255   : > { %v3467_v50 = vpack.c.bf16 %v1056_v47, %v1056_v47 }
 0x256   : > { %v1058_v51 = vpop.f32.mrf.mxu0 }
 0x257   : > { %v1059_v52 = vadd.f32 %v2628_v44, %v1058_v51  ;;  %v1149_v53 = vsel %vm1144_vm3, %v3467_v50, 0 }
 0x258   : > { %v2754_v54 = vpop.f32.mrf.mxu0  ;;  %2764 = vmatpush3.bf16.xpose.msra.mxu1 %v1149_v53 }
 0x259   : > { %v3476_v58 = vpack.c.bf16 %v1059_v52, %v1059_v52  ;;  %2775 = vmatprep.subr.bf16.mxu1 %v3159_v17 }
 0x25a   : > { %v1119_v59 = vpop.f32.mrf.mxu0 }
 0x25b   : > { %v1120_v60 = vadd.f32 %v2632_v55, %v1119_v59  ;;  %v1195_v61 = vsel %vm1144_vm3, %v3476_v58, 0 }
 0x25c   : > { %v2761_v62 = vpop.f32.mrf.mxu0  ;;  %2770 = vmatpush3.bf16.xpose.msra.mxu0 %v1195_v61 }
 0x25d   : > { %v3483_v1 = vpack.c.bf16 %v1120_v60, %v1120_v60  ;;  %2781 = vmatprep.subr.bf16.mxu0 %v3159_v17 }
 0x25e   : > { %v1122_v4 = vpop.f32.mrf.mxu0 }
 0x25f   : > { %v1123_v5 = vadd.f32 %v2632_v55, %v1122_v4  ;;  %2766 = vmatmul.mubr.msk.bf16.vlgmr.msra.gmra.mxu1 %vm1144_vm3, %v3481_v63  ;;  %v1266_v6 = vsel %vm1264_vm4, %v3483_v1, 0 }
 0x260   : > { %v2762_v7 = vpop.f32.mrf.mxu0  ;;  %2776 = vmatpush3.bf16.msra.mxu1 %v1266_v6  ;;  %2777 = vmatprep.mubr.msk.bf16.mxu1 %vm3160_vm2, %v3159_v17 }
 0x261   : > { %v3494_v9 = vpack.c.bf16 %v1123_v5, %v1123_v5  ;;  %2787 = vmatprep.subr.bf16.mxu1 %v3159_v17 }
 0x263   : > { %2772 = vmatmul.mubr.msk.bf16.vlgmr.msra.gmra.mxu0 %vm1144_vm3, %v3492_v8  ;;  %v1312_v10 = vsel %vm1264_vm4, %v3494_v9, 0 }
 0x264   : > { %2782 = vmatpush3.bf16.msra.mxu0 %v1312_v10  ;;  %2783 = vmatprep.mubr.msk.bf16.mxu0 %vm3160_vm2, %v3159_v17 }
 0x265   : > { %2793 = vmatprep.subr.bf16.mxu0 %v3159_v17 }
 0x31f   : > { %v1185_v12 = vpop.f32.mrf.mxu1 }
 0x320   : > { %v1186_v13 = vadd.f32 %v3504_v11, %v1185_v12 }
 0x321   : > { %v2767_v14 = vpop.f32.mrf.mxu1 }
 0x322   : > { %v1237_v16 = vsel %vm1144_vm3, %v1186_v13, -inf }
 0x323   : > { %1238 = vmax.xlane.f32.xlu0 %v1237_v16  ;;  %v1188_v18 = vpop.f32.mrf.mxu1  ;;  %v1231_v19 = vpop.f32.mrf.mxu0 }
 0x324   : > { %v1232_v20 = vadd.f32 %v3507_v15, %v1231_v19 }
 0x325   : > { %v2768_v21 = vpop.f32.mrf.mxu1  ;;  %v2773_v22 = vpop.f32.mrf.mxu0 }
 0x326   : > { %v1240_v23 = vsel %vm1144_vm3, %v1232_v20, -inf }
 0x327   : > { %1241 = vmax.xlane.f32.xlu1 %v1240_v23  ;;  %v1234_v24 = vpop.f32.mrf.mxu0 }
 0x329   : > { %v2774_v25 = vpop.f32.mrf.mxu0 }
 0x338   : > { %1410 = vrot.lane.b32.xlu1 %v3476_v58, %s3161_s27 }
 0x3ac   : > { %v1239_v26 = vpop.xlane.xlu0 %1238 }
 0x3ad   : > { %v1243_v27 = vsub.f32 %v1186_v13, %v1239_v26 }
 0x3af   : > { %v1245_v28 = vmul.f32 1.442695, %v1243_v27 }
 0x3b0   : > { %v1242_v29 = vpop.xlane.xlu1 %1241 }
 0x3b1   : > { %2997 = vpow2.f32 %v1245_v28  ;;  %v1244_v30 = vsub.f32 %v1232_v20, %v1242_v29 }
 0x3b3   : > { %v1247_v31 = vmul.f32 1.442695, %v1244_v30 }
 0x3b4   : > { %v1411_v36 = vpop.permute.xlu1 %1410 }
 0x3b5   : > { %2999 = vpow2.f32 %v1247_v31  ;;  %v1416_v47 = vsel %vm1144_vm3, %v1411_v36, 0 }
 0x3be   : > { %v2998_v32 = vpop.eup %2997 }
 0x3bf   : > { %v1249_v33 = vsel %vm1144_vm3, %v2998_v32, 0.0 }
 0x3c0   : > { %1250 = vadd.xlane.f32.xlu0 %v1249_v33 }
 0x3c2   : > { %v3000_v34 = vpop.eup %2999 }
 0x3c3   : > { %v1252_v35 = vsel %vm1144_vm3, %v3000_v34, 0.0 }
 0x3c4   : > { %1253 = vadd.xlane.f32.xlu1 %v1252_v35 }
 0x3d5   : > { %1355 = vrot.lane.b32.xlu1 %v3481_v63, %s3161_s27 }
 0x3d6   : > { %1358 = vrot.lane.b32.xlu0 %v3467_v50, %s3161_s27 }
 0x3d9   : > { %1407 = vrot.lane.b32.xlu1 %v3492_v8, %s3161_s27 }
 0x449   : > { %v1251_v37 = vpop.xlane.xlu0 %1250 }
 0x44a   : > { %3001 = vrcp.f32 %v1251_v37 }
 0x44d   : > { %v1254_v38 = vpop.xlane.xlu1 %1253  ;;  %v1359_v41 = vpop.permute.xlu0 %1358 }
 0x44e   : > { %3003 = vrcp.f32 %v1254_v38  ;;  %v1364_v44 = vsel %vm1144_vm3, %v1359_v41, 0 }
 0x451   : > { %v1356_v48 = vpop.permute.xlu1 %1355 }
 0x455   : > { %v1408_v49 = vpop.permute.xlu1 %1407 }
 0x457   : > { %v3002_v39 = vpop.eup %3001 }
 0x458   : > { %v1257_v40 = vmul.f32 %v3002_v39, %v2998_v32 }
 0x45a   : > { %v1259_v42 = vpack.c.bf16 %v1257_v40, %v1257_v40 }
 0x45b   : > { %v3004_v43 = vpop.eup %3003 }
 0x45c   : > { %2778 = vmatmul.mubr.msk.bf16.vlgmr.msra.gmra.mxu1 %vm1144_vm3, %v1259_v42  ;;  %v1258_v45 = vmul.f32 %v3004_v43, %v3000_v34 }
 0x45d   : > { %2788 = vmatpush3.bf16.xpose.msra.mxu1 %v1364_v44  ;;  %2789 = vmatprep.mubr.msk.bf16.mxu1 %vm3160_vm2, %v3159_v17 }
 0x45e   : > { %v1260_v46 = vpack.c.bf16 %v1258_v45, %v1258_v45  ;;  %2799 = vmatprep.subr.bf16.mxu1 %v3159_v17 }
 0x460   : > { %2784 = vmatmul.mubr.msk.bf16.vlgmr.msra.gmra.mxu0 %vm1144_vm3, %v1260_v46 }
 0x461   : > { %2794 = vmatpush3.bf16.xpose.msra.mxu0 %v1416_v47  ;;  %2795 = vmatprep.mubr.msk.bf16.mxu0 %vm3160_vm2, %v3159_v17 }
 0x462   : > { %2805 = vmatprep.subr.bf16.mxu0 %v3159_v17 }
 0x464   : > { %2790 = vmatmul.mubr.msk.bf16.vlgmr.msra.gmra.mxu1 %vm1144_vm3, %v1356_v48 }
 0x465   : > { %2801 = vmatprep.mubr.msk.bf16.mxu1 %vm3160_vm2, %v3159_v17 }
 0x468   : > { %2796 = vmatmul.mubr.msk.bf16.vlgmr.msra.gmra.mxu0 %vm1144_vm3, %v1408_v49 }
 0x469   : > { %2807 = vmatprep.mubr.msk.bf16.mxu0 %vm3160_vm2, %v3159_v17 }
 0x51c   : > { %v3538_v51 = vpop.f32.mrf.mxu1 }
 0x51e   : > { %v2779_v52 = vpop.f32.mrf.mxu1 }
 0x520   : > { %v1305_v53 = vpop.f32.mrf.mxu1  ;;  %v3540_v54 = vpop.f32.mrf.mxu0 }
 0x522   : > { %v2780_v55 = vpop.f32.mrf.mxu1  ;;  %v2785_v56 = vpop.f32.mrf.mxu0 }
 0x524   : > { %v1351_v57 = vpop.f32.mrf.mxu0  ;;  %v1400_v59 = vpop.f32.mrf.mxu1 }
 0x525   : > { %v1401_v60 = vadd.f32 %v3504_v11, %v1400_v59 }
 0x526   : > { %v2786_v61 = vpop.f32.mrf.mxu0  ;;  %v2791_v62 = vpop.f32.mrf.mxu1 }
 0x527   : > { %v1458_v0 = vsel %vm1144_vm3, %v1401_v60, -inf }
 0x528   : > { %1459 = vmax.xlane.f32.xlu0 %v1458_v0  ;;  %v1403_v4 = vpop.f32.mrf.mxu1  ;;  %v1452_v5 = vpop.f32.mrf.mxu0 }
 0x529   : > { %v1453_v6 = vadd.f32 %v3507_v15, %v1452_v5 }
 0x52a   : > { %v2792_v7 = vpop.f32.mrf.mxu1  ;;  %v2797_v10 = vpop.f32.mrf.mxu0 }
 0x52b   : > { %v1461_v12 = vsel %vm1144_vm3, %v1453_v6, -inf }
 0x52c   : > { %1462 = vmax.xlane.f32.xlu1 %v1461_v12  ;;  %v1455_v13 = vpop.f32.mrf.mxu0 }
 0x52e   : > { %v2798_v14 = vpop.f32.mrf.mxu0 }
 0x53d   : > { %1532 = vrot.lane.b32.xlu1 %v3494_v9, %s3161_s27 }
 0x541   : > { %1582 = vrot.lane.b32.xlu1 %v3467_v50, %s3162_s21 }
 0x545   : > { %1632 = vrot.lane.b32.xlu1 %v3476_v58, %s3162_s21 }
 0x549   : > { %1630 = vrot.lane.b32.xlu1 %v3492_v8, %s3162_s21 }
 0x5b1   : > { %v1460_v16 = vpop.xlane.xlu0 %1459 }
 0x5b2   : > { %v1464_v18 = vsub.f32 %v1401_v60, %v1460_v16 }
 0x5b4   : > { %v1466_v19 = vmul.f32 1.442695, %v1464_v18 }
 0x5b5   : > { %v1463_v20 = vpop.xlane.xlu1 %1462 }
 0x5b6   : > { %3005 = vpow2.f32 %v1466_v19  ;;  %v1465_v21 = vsub.f32 %v1453_v6, %v1463_v20 }
 0x5b8   : > { %v1468_v22 = vmul.f32 1.442695, %v1465_v21 }
 0x5b9   : > { %v1533_v23 = vpop.permute.xlu1 %1532 }
 0x5ba   : > { %3007 = vpow2.f32 %v1468_v22  ;;  %v1538_v24 = vsel %vm1264_vm4, %v1533_v23, 0 }
 0x5bb   : > { %2806 = vmatpush3.bf16.msra.mxu0 %v1538_v24 }
 0x5bc   : > { %2817 = vmatprep.subr.bf16.mxu0 %v3159_v17 }
 0x5bd   : > { %v1583_v34 = vpop.permute.xlu1 %1582 }
 0x5be   : > { %v1588_v38 = vsel %vm1144_vm3, %v1583_v34, 0 }
 0x5c1   : > { %v1633_v40 = vpop.permute.xlu1 %1632 }
 0x5c2   : > { %v1638_v42 = vsel %vm1144_vm3, %v1633_v40, 0 }
 0x5c3   : > { %v3006_v25 = vpop.eup %3005 }
 0x5c4   : > { %v1470_v26 = vsel %vm1144_vm3, %v3006_v25, 0.0 }
 0x5c5   : > { %1471 = vadd.xlane.f32.xlu0 %v1470_v26  ;;  %v1631_v44 = vpop.permute.xlu1 %1630 }
 0x5c7   : > { %v3008_v27 = vpop.eup %3007 }
 0x5c8   : > { %v1473_v28 = vsel %vm1144_vm3, %v3008_v27, 0.0 }
 0x5c9   : > { %1474 = vadd.xlane.f32.xlu0 %v1473_v28 }
 0x5df   : > { %1483 = vrot.lane.b32.xlu0 %v3483_v1, %s3161_s27  ;;  %s2372_s27 = sshll.u32 %s3167_s10, 4  ;;  %s2373_s27 = int_to_ptr.vmem [resolvable:$true] %s2372_s27 }
 0x5e0   : > { %p3100_p0 = scmp.lt.s32.totalorder %s2373_s27, %s2373_s27 }
 0x5e3   : > { %1580 = vrot.lane.b32.xlu0 %v3481_v63, %s3162_s21 }
 0x64e   : > { %v1472_v29 = vpop.xlane.xlu0 %1471 }
 0x64f   : > { %3009 = vrcp.f32 %v1472_v29 }
 0x652   : > { %v1475_v30 = vpop.xlane.xlu0 %1474 }
 0x653   : > { %3011 = vrcp.f32 %v1475_v30 }
 0x656   : > { %v1484_v31 = vpop.permute.xlu0 %1483 }
 0x657   : > { %v1489_v32 = vsel %vm1264_vm4, %v1484_v31, 0 }
 0x658   : > { %2800 = vmatpush3.bf16.msra.mxu1 %v1489_v32 }
 0x659   : > { %2811 = vmatprep.subr.bf16.mxu1 %v3159_v17 }
 0x65a   : > { %v1581_v43 = vpop.permute.xlu0 %1580 }
 0x65c   : > { %v3010_v33 = vpop.eup %3009 }
 0x65d   : > { %v1478_v35 = vmul.f32 %v3010_v33, %v3006_v25 }
 0x65f   : > { %v1480_v36 = vpack.c.bf16 %v1478_v35, %v1478_v35 }
 0x660   : > { %v3012_v37 = vpop.eup %3011 }
 0x661   : > { %2802 = vmatmul.mubr.msk.bf16.vlgmr.msra.gmra.mxu1 %vm1144_vm3, %v1480_v36  ;;  %v1479_v39 = vmul.f32 %v3012_v37, %v3008_v27 }
 0x662   : > { %2812 = vmatpush3.bf16.xpose.msra.mxu1 %v1588_v38  ;;  %2813 = vmatprep.mubr.msk.bf16.mxu1 %vm3160_vm2, %v3159_v17 }
 0x663   : > { %v1481_v41 = vpack.c.bf16 %v1479_v39, %v1479_v39  ;;  %2823 = vmatprep.subr.bf16.mxu1 %v3159_v17 }
 0x665   : > { %2808 = vmatmul.mubr.msk.bf16.vlgmr.msra.gmra.mxu0 %vm1144_vm3, %v1481_v41 }
 0x666   : > { %2818 = vmatpush3.bf16.xpose.msra.mxu0 %v1638_v42  ;;  %2819 = vmatprep.mubr.msk.bf16.mxu0 %vm3160_vm2, %v3159_v17 }
 0x667   : > { %2829 = vmatprep.subr.bf16.mxu0 %v3159_v17 }
 0x669   : > { %2814 = vmatmul.mubr.msk.bf16.vlgmr.msra.gmra.mxu1 %vm1144_vm3, %v1581_v43 }
 0x66a   : > { %2825 = vmatprep.mubr.msk.bf16.mxu1 %vm3160_vm2, %v3159_v17 }
 0x66d   : > { %2820 = vmatmul.mubr.msk.bf16.vlgmr.msra.gmra.mxu0 %vm1144_vm3, %v1631_v44 }
 0x66e   : > { %2831 = vmatprep.mubr.msk.bf16.mxu0 %vm3160_vm2, %v3159_v17 }
 0x721   : > { %v3580_v45 = vpop.f32.mrf.mxu1 }
 0x723   : > { %v2803_v46 = vpop.f32.mrf.mxu1 }
 0x725   : > { %v1528_v47 = vpop.f32.mrf.mxu1  ;;  %v3582_v48 = vpop.f32.mrf.mxu0 }
 0x726   : > { %v2960_v49 = vpack.i.bf16 %v3582_v48, %v3580_v45 }
 0x727   : > { %v2804_v52 = vpop.f32.mrf.mxu1  ;;  %v2809_v53 = vpop.f32.mrf.mxu0 }
 0x729   : > { %v1577_v55 = vpop.f32.mrf.mxu0  ;;  %v1624_v56 = vpop.f32.mrf.mxu1 }
 0x72a   : > { %v1625_v57 = vadd.f32 %v3504_v11, %v1624_v56 }
 0x72b   : > { %v2810_v59 = vpop.f32.mrf.mxu0  ;;  %v2815_v60 = vpop.f32.mrf.mxu1 }
 0x72c   : > { %v1680_v61 = vsel %vm1144_vm3, %v1625_v57, -inf }
 0x72d   : > { %1681 = vmax.xlane.f32.xlu0 %v1680_v61  ;;  %v1627_v62 = vpop.f32.mrf.mxu1  ;;  %v1674_v0 = vpop.f32.mrf.mxu0 }
 0x72e   : > { %v1675_v4 = vadd.f32 %v3507_v15, %v1674_v0 }
 0x72f   : > { %v2816_v5 = vpop.f32.mrf.mxu1  ;;  %v2821_v6 = vpop.f32.mrf.mxu0 }
 0x730   : > { %v1683_v7 = vsel %vm1144_vm3, %v1675_v4, -inf }
 0x731   : > { %1684 = vmax.xlane.f32.xlu1 %v1683_v7  ;;  %v1677_v10 = vpop.f32.mrf.mxu0 }
 0x733   : > { %v2822_v12 = vpop.f32.mrf.mxu0 }
 0x742   : > { %1752 = vrot.lane.b32.xlu1 %v3494_v9, %s3162_s21 }
 0x746   : > { %1802 = vrot.lane.b32.xlu1 %v3467_v50, %s3163_s2 }
 0x74a   : > { %1852 = vrot.lane.b32.xlu1 %v3476_v58, %s3163_s2 }
 0x74e   : > { %1850 = vrot.lane.b32.xlu1 %v3492_v8, %s3163_s2 }
 0x7b6   : > { %v1682_v13 = vpop.xlane.xlu0 %1681 }
 0x7b7   : > { %v1686_v14 = vsub.f32 %v1625_v57, %v1682_v13 }
 0x7b9   : > { %v1688_v16 = vmul.f32 1.442695, %v1686_v14 }
 0x7ba   : > { %v1685_v18 = vpop.xlane.xlu1 %1684 }
 0x7bb   : > { %3013 = vpow2.f32 %v1688_v16  ;;  %v1687_v19 = vsub.f32 %v1675_v4, %v1685_v18 }
 0x7bd   : > { %v1690_v20 = vmul.f32 1.442695, %v1687_v19 }
 0x7be   : > { %v1753_v21 = vpop.permute.xlu1 %1752 }
 0x7bf   : > { %3015 = vpow2.f32 %v1690_v20  ;;  %v1758_v22 = vsel %vm1264_vm4, %v1753_v21, 0 }
 0x7c0   : > { %2830 = vmatpush3.bf16.msra.mxu0 %v1758_v22 }
 0x7c1   : > { %2841 = vmatprep.subr.bf16.mxu0 %v3159_v17 }
 0x7c2   : > { %v1803_v29 = vpop.permute.xlu1 %1802 }
 0x7c3   : > { %v1808_v33 = vsel %vm1144_vm3, %v1803_v29, 0 }
 0x7c6   : > { %v1853_v34 = vpop.permute.xlu1 %1852 }
 0x7c7   : > { %v1858_v36 = vsel %vm1144_vm3, %v1853_v34, 0 }
 0x7c8   : > { %v3014_v50 = vpop.eup %3013 }
 0x7c9   : > { %v1692_v58 = vsel %vm1144_vm3, %v3014_v50, 0.0 }
 0x7ca   : > { %1693 = vadd.xlane.f32.xlu0 %v1692_v58  ;;  %v1851_v38 = vpop.permute.xlu1 %1850 }
 0x7cc   : > { %v3016_v23 = vpop.eup %3015 }
 0x7cd   : > { %v1695_v8 = vsel %vm1144_vm3, %v3016_v23, 0.0 }
 0x7ce   : > { %1696 = vadd.xlane.f32.xlu0 %v1695_v8 }
 0x7e4   : > { %1704 = vrot.lane.b32.xlu0 %v3483_v1, %s3162_s21 }
 0x7e8   : > { %1800 = vrot.lane.b32.xlu0 %v3481_v63, %s3163_s2 }
 0x853   : > { %v1694_v24 = vpop.xlane.xlu0 %1693 }
 0x854   : > { %3017 = vrcp.f32 %v1694_v24  ;;  %v2981_v24 = vld [vmem:[%s3374_s4 + $0x8] sm:$0xff]  }
 0x857   : > { %v1697_v25 = vpop.xlane.xlu0 %1696 }
 0x858   : > { %3019 = vrcp.f32 %v1697_v25  ;;  %v2982_v25 = vld [vmem:[%s3374_s4] sm:$0xff]  }
 0x85b   : > { %v1705_v26 = vpop.permute.xlu0 %1704 }
 0x85c   : > { %v1710_v27 = vsel %vm1264_vm4, %v1705_v26, 0 }
 0x85d   : > { %2824 = vmatpush3.bf16.msra.mxu1 %v1710_v27 }
 0x85e   : > { %2835 = vmatprep.subr.bf16.mxu1 %v3159_v17 }
 0x85f   : > { %v1801_v37 = vpop.permute.xlu0 %1800 }
 0x861   : > { %v3018_v28 = vpop.eup %3017 }
 0x862   : > { %v1700_v30 = vmul.f32 %v3018_v28, %v3014_v50 }
 0x864   : > { %v1702_v31 = vpack.c.bf16 %v1700_v30, %v1700_v30 }
 0x865   : > { %v3020_v32 = vpop.eup %3019 }
 0x866   : > { %2826 = vmatmul.mubr.msk.bf16.vlgmr.msra.gmra.mxu1 %vm1144_vm3, %v1702_v31  ;;  %v1701_v63 = vmul.f32 %v3020_v32, %v3016_v23 }
 0x867   : > { %2836 = vmatpush3.bf16.xpose.msra.mxu1 %v1808_v33  ;;  %2837 = vmatprep.mubr.msk.bf16.mxu1 %vm3160_vm2, %v3159_v17 }
 0x868   : > { %v1703_v35 = vpack.c.bf16 %v1701_v63, %v1701_v63  ;;  %2847 = vmatprep.subr.bf16.mxu1 %v3159_v17 }
 0x86a   : > { %2832 = vmatmul.mubr.msk.bf16.vlgmr.msra.gmra.mxu0 %vm1144_vm3, %v1703_v35 }
 0x86b   : > { %2842 = vmatpush3.bf16.xpose.msra.mxu0 %v1858_v36  ;;  %2843 = vmatprep.mubr.msk.bf16.mxu0 %vm3160_vm2, %v3159_v17 }
 0x86c   : > { %2853 = vmatprep.subr.bf16.mxu0 %v3159_v17 }
 0x86e   : > { %2838 = vmatmul.mubr.msk.bf16.vlgmr.msra.gmra.mxu1 %vm1144_vm3, %v1801_v37 }
 0x86f   : > { %2849 = vmatprep.mubr.msk.bf16.mxu1 %vm3160_vm2, %v3159_v17 }
 0x872   : > { %2844 = vmatmul.mubr.msk.bf16.vlgmr.msra.gmra.mxu0 %vm1144_vm3, %v1851_v38 }
 0x873   : > { %2855 = vmatprep.mubr.msk.bf16.mxu0 %vm3160_vm2, %v3159_v17 }
 0x926   : > { %v1746_v39 = vpop.f32.mrf.mxu1 }
 0x928   : > { %v2827_v40 = vpop.f32.mrf.mxu1 }
 0x92a   : > { %v1749_v41 = vpop.f32.mrf.mxu1  ;;  %v1794_v42 = vpop.f32.mrf.mxu0 }
 0x92c   : > { %v2828_v43 = vpop.f32.mrf.mxu1  ;;  %v2833_v44 = vpop.f32.mrf.mxu0 }
 0x92e   : > { %v1797_v46 = vpop.f32.mrf.mxu0  ;;  %v1844_v47 = vpop.f32.mrf.mxu1 }
 0x92f   : > { %v1845_v52 = vadd.f32 %v3504_v11, %v1844_v47  ;;  %v2965_v11 = vpack.i.bf16 %v1794_v42, %v1746_v39 }
 0x930   : > { %v2834_v53 = vpop.f32.mrf.mxu0  ;;  %v2839_v55 = vpop.f32.mrf.mxu1 }
 0x931   : > { %v1900_v56 = vsel %vm1144_vm3, %v1845_v52, -inf }
 0x932   : > { %1901 = vmax.xlane.f32.xlu0 %v1900_v56  ;;  %v1847_v57 = vpop.f32.mrf.mxu1  ;;  %v1894_v59 = vpop.f32.mrf.mxu0 }
 0x933   : > { %v1895_v60 = vadd.f32 %v3507_v15, %v1894_v59 }
 0x934   : > { %v2840_v61 = vpop.f32.mrf.mxu1  ;;  %v2845_v62 = vpop.f32.mrf.mxu0 }
 0x935   : > { %v1903_v0 = vsel %vm1144_vm3, %v1895_v60, -inf }
 0x936   : > { %1904 = vmax.xlane.f32.xlu1 %v1903_v0  ;;  %v1897_v4 = vpop.f32.mrf.mxu0 }
 0x938   : > { %v2846_v5 = vpop.f32.mrf.mxu0 }
 0x947   : > { %1972 = vrot.lane.b32.xlu1 %v3494_v9, %s3163_s2 }
 0x94b   : > { %2961 = vrot.lane.b32.xlu1 %v2960_v49, %s3164_s0 }
 0x94f   : > { %2966 = vrot.lane.b32.xlu1 %v2965_v11, %s3165_s19 }
 0x9bb   : > { %v1902_v15 = vpop.xlane.xlu0 %1901 }
 0x9bc   : > { %v1906_v6 = vsub.f32 %v1845_v52, %v1902_v15 }
 0x9be   : > { %v1908_v7 = vmul.f32 1.442695, %v1906_v6 }
 0x9bf   : > { %v1905_v10 = vpop.xlane.xlu1 %1904 }
 0x9c0   : > { %3021 = vpow2.f32 %v1908_v7  ;;  %v1907_v12 = vsub.f32 %v1895_v60, %v1905_v10 }
 0x9c2   : > { %v1910_v13 = vmul.f32 1.442695, %v1907_v12 }
 0x9c3   : > { %v1973_v14 = vpop.permute.xlu1 %1972 }
 0x9c4   : > { %3023 = vpow2.f32 %v1910_v13  ;;  %v1978_v9 = vsel %vm1264_vm4, %v1973_v14, 0 }
 0x9c5   : > { %2854 = vmatpush3.bf16.msra.mxu0 %v1978_v9  ;;  %v2983_v9 = vld [vmem:[%s3391_s23 + $0x8] sm:$0xff]  }
 0x9c6   : > { %2867 = vmatprep.subr.bf16.mxu0 %v3159_v17 }
 0x9c7   : > { %v2962_v34 = vpop.permute.xlu1 %2961 }
 0x9c8   : > { %v2964_v36 = vunpack.i.h.bf16 %v2962_v34  ;;  %v2963_v37 = vunpack.i.l.bf16 %v2962_v34  ;;  %v2992_v34 = vld [vmem:[%s3401_s6] sm:$0xff]  }
 0x9ca   : > { %v2045_v41 = vsel %vm1144_vm3, %v3540_v54, %v2964_v36  ;;  %v2044_v42 = vsel %vm1144_vm3, %v3538_v51, %v2963_v37  ;;  %v2654_v54 = vld [vmem:[%s3805_s3] ss:$0 sm:$0xff] }
 0x9cb   : > { %v2967_v35 = vpop.permute.xlu1 %2966 }
 0x9cc   : > { %v2969_v38 = vunpack.i.h.bf16 %v2967_v35  ;;  %v2968_v39 = vunpack.i.l.bf16 %v2967_v35  ;;  %v2660_v35 = vld [vmem:[%s858_s26] ss:$0 sm:$0xff] }
 0x9cd   : > { %v3022_v16 = vpop.eup %3021 }
 0x9ce   : > { %v1912_v45 = vsel %vm1144_vm3, %v3022_v16, 0.0  ;;  %v2047_v46 = vsel %vm2046_vm5, %v2044_v42, %v2968_v39  ;;  %v2048_v47 = vsel %vm2046_vm5, %v2045_v41, %v2969_v38 }
 0x9cf   : > { %1913 = vadd.xlane.f32.xlu0 %v1912_v45 }
 0x9d1   : > { %v3024_v48 = vpop.eup %3023 }
 0x9d2   : > { %v1915_v49 = vsel %vm1144_vm3, %v3024_v48, 0.0 }
 0x9d3   : > { %1916 = vadd.xlane.f32.xlu0 %v1915_v49 }
 0x9e9   : > { %1924 = vrot.lane.b32.xlu0 %v3483_v1, %s3163_s2 }
 0xa58   : > { %v1914_v18 = vpop.xlane.xlu0 %1913 }
 0xa59   : > { %3025 = vrcp.f32 %v1914_v18 }
 0xa5c   : > { %v1917_v19 = vpop.xlane.xlu0 %1916 }
 0xa5d   : > { %3027 = vrcp.f32 %v1917_v19 }
 0xa60   : > { %v1925_v20 = vpop.permute.xlu0 %1924 }
 0xa61   : > { %v1930_v21 = vsel %vm1264_vm4, %v1925_v20, 0 }
 0xa62   : > { %2848 = vmatpush3.bf16.msra.mxu1 %v1930_v21 }
 0xa63   : > { %2859 = vmatprep.subr.bf16.mxu1 %v3159_v17 }
 0xa66   : > { %v3026_v22 = vpop.eup %3025 }
 0xa67   : > { %v1920_v50 = vmul.f32 %v3026_v22, %v3022_v16  ;;  %v2984_v16 = vld [vmem:[%s3391_s23] sm:$0xff]   ;;  %s3806_s23 = scalar_lea.vmem %s3760_s12, %s3333_s18  ;;  %s3093_s18 = scalar_lea.vmem %s2373_s27, 256 }
 0xa68   : > { %p3094_p6 = scmp.ne.s32.totalorder %s2373_s27, %s3093_s18  ;;  %p3101_p1 = scmp.lt.s32.totalorder %s3093_s18, %s3093_s18 }
 0xa69   : > { %v1922_v58 = vpack.c.bf16 %v1920_v50, %v1920_v50  ;;  %v2658_v50 = vld [vmem:[%s3806_s23] ss:$0 sm:$0xff] }
 0xa6a   : > { %v3028_v23 = vpop.eup %3027  ;;  %p3102_p2 = por %p3101_p1, %p3100_p0 }
 0xa6b   : > { %2850 = vmatmul.mubr.msk.bf16.vlgmr.msra.gmra.mxu1 %vm1144_vm3, %v1922_v58  ;;  %v1921_v8 = vmul.f32 %v3028_v23, %v3024_v48 }
 0xa6c   : > { %2863 = vmatprep.mubr.msk.bf16.mxu1 %vm3160_vm2, %v3159_v17  ;;  %2860 = vmatpush3.bf16.msra.mxu1 %v2981_v24 }
 0xa6d   : > { %v1923_v1 = vpack.c.bf16 %v1921_v8, %v1921_v8  ;;  %2861 = vmatprep.subr.bf16.mxu1 %v3159_v17 }
 0xa6f   : > { %2856 = vmatmul.mubr.msk.bf16.vlgmr.msra.gmra.mxu0 %vm1144_vm3, %v1923_v1  ;;  %v2659_v1 = vld [vmem:[%s850_s8] ss:$0 sm:$0xff] }
 0xa70   : > { %2871 = vmatprep.mubr.msk.bf16.mxu0 %vm3160_vm2, %v3159_v17  ;;  %2862 = vmatpush3.bf16.msra.mxu1 %v2982_v25 }
 0xa71   : > { %2875 = vmatprep.subr.bf16.mxu1 %v3159_v17  ;;  %2868 = vmatpush3.bf16.msra.mxu0 %v2983_v9 }
 0xa72   : > { %2869 = vmatprep.subr.bf16.mxu0 %v3159_v17 }
 0xa75   : > { %2870 = vmatpush3.bf16.msra.mxu0 %v2984_v16 }
 0xb2b   : > { %v1966_v26 = vpop.f32.mrf.mxu1 }
 0xb2d   : > { %v2851_v27 = vpop.f32.mrf.mxu1 }
 0xb2f   : > { %v1969_v28 = vpop.f32.mrf.mxu1  ;;  %v2014_v29 = vpop.f32.mrf.mxu0 }
 0xb30   : > { %v2970_v30 = vpack.i.bf16 %v2014_v29, %v1966_v26  ;;  %v2985_v28 = vld [vmem:[%s3401_s6 + $0x38] sm:$0xff]   ;;  %v2986_v29 = vld [vmem:[%s3401_s6 + $0x30] sm:$0xff]  }
 0xb31   : > { %v2852_v31 = vpop.f32.mrf.mxu1  ;;  %v2857_v32 = vpop.f32.mrf.mxu0 }
 0xb32   : > { %2971 = vrot.lane.b32.xlu0 %v2970_v30, %s3166_s22  ;;  %v2987_v30 = vld [vmem:[%s3401_s6 + $0x28] sm:$0xff]   ;;  %v2988_v31 = vld [vmem:[%s3401_s6 + $0x20] sm:$0xff]   ;;  %v2989_v32 = vld [vmem:[%s3401_s6 + $0x18] sm:$0xff]  }
 0xb33   : > { %v2017_v33 = vpop.f32.mrf.mxu0 }
 0xb34   : > { %v2990_v33 = vld [vmem:[%s3401_s6 + $0x10] sm:$0xff]  }
 0xb35   : > { %v2858_v63 = vpop.f32.mrf.mxu0 }
 0xb36   : > { %v2991_v63 = vld [vmem:[%s3401_s6 + $0x8] sm:$0xff]   ;;  %s3807_s6 = sld [smem:[#allocation12_spill]] }
 0xb3c   : > { %s3809_s21 = sadd.s32 4294967295, %s3807_s6  }
 0xb3d   : > { %p3721_p4 = scmp.eq.s32.totalorder %s3809_s21, 1 }
 0xb3f   : > { %p3095_p12 = pnand %p3094_p6, %p3721_p4 }
 0xb41   : > { %p3096_p13 = pneg %p3095_p12 }
 0xb43   : > { %p3103_p5 = pnand %p3102_p2, %p3096_p13 }
 0xba4   : > { %v2972_v40 = vpop.permute.xlu0 %2971 }
 0xba5   : > { %v2974_v43 = vunpack.i.h.bf16 %v2972_v40  ;;  %v2973_v44 = vunpack.i.l.bf16 %v2972_v40 }
 0xba7   : > { %v2051_v52 = vsel %vm2049_vm6, %v2048_v47, %v2974_v43  ;;  %v2050_v53 = vsel %vm2049_vm6, %v2047_v46, %v2973_v44 }
 0xba8   : > { %v2052_v55 = vpack.c.bf16 %v2051_v52, %v2050_v53 }
 0xbaa   : > { %2864 = vmatmul.mubr.msk.bf16.vlgmr.msra.gmra.mxu1 %vm884_vm1, %v2052_v55 }
 0xbab   : > { %2891 = vmatprep.mubr.msk.bf16.mxu1 %vm3160_vm2, %v3159_v17  ;;  %2876 = vmatpush3.bf16.msra.mxu1 %v2985_v28 }
 0xbac   : > { %2877 = vmatprep.subr.bf16.mxu1 %v3159_v17 }
 0xbaf   : > { %2878 = vmatpush3.bf16.msra.mxu1 %v2986_v29 }
 0xbb0   : > { %2879 = vmatprep.subr.bf16.mxu1 %v3159_v17 }
 0xbb3   : > { %2880 = vmatpush3.bf16.msra.mxu1 %v2987_v30 }
 0xbb4   : > { %2881 = vmatprep.subr.bf16.mxu1 %v3159_v17 }
 0xbb7   : > { %2882 = vmatpush3.bf16.msra.mxu1 %v2988_v31 }
 0xbb8   : > { %2883 = vmatprep.subr.bf16.mxu1 %v3159_v17 }
 0xbbb   : > { %2884 = vmatpush3.bf16.msra.mxu1 %v2989_v32 }
 0xbbc   : > { %2885 = vmatprep.subr.bf16.mxu1 %v3159_v17 }
 0xbbf   : > { %2886 = vmatpush3.bf16.msra.mxu1 %v2990_v33 }
 0xbc0   : > { %2887 = vmatprep.subr.bf16.mxu1 %v3159_v17 }
 0xbc3   : > { %2888 = vmatpush3.bf16.msra.mxu1 %v2991_v63 }
 0xbc4   : > { %2889 = vmatprep.subr.bf16.mxu1 %v3159_v17 }
 0xbc7   : > { %2890 = vmatpush3.bf16.msra.mxu1 %v2992_v34 }
 0xc6a   : > { %v2113_v56 = vpop.f32.mrf.mxu1 }
 0xc6b   : > { %v2114_v57 = vadd.f32 %v2654_v54, %v2113_v56 }
 0xc6c   : > { %v2865_v51 = vpop.f32.mrf.mxu1 }
 0xc6d   : > { %v3665_v59 = vadd.f32 %v2114_v57, %v3408_v2 }
 0xc6e   : > { %v2116_v60 = vpop.f32.mrf.mxu1 }
 0xc6f   : > { %v2117_v61 = vadd.f32 %v2654_v54, %v2116_v60  ;;  %v2124_v62 = vsel %vm884_vm1, %v3665_v59, 0.0  ;;  %v2664_v60 = vld [vmem:[%s866_s1] ss:$0 sm:$0xff] }
 0xc70   : > { %2125 = vadd.xlane.f32.xlu1 %v2124_v62  ;;  %v2866_v0 = vpop.f32.mrf.mxu1 }
 0xc71   : > { %v3670_v4 = vadd.f32 %v2117_v61, %v3410_v3 }
 0xc73   : > { %v2127_v5 = vsel %vm884_vm1, %v3670_v4, 0.0 }
 0xc74   : > { %2128 = vadd.xlane.f32.xlu0 %v2127_v5 }
 0xcf9   : > { %v2126_v11 = vpop.xlane.xlu1 %2125 }
 0xcfa   : > { %v2130_v15 = vmul.f32 0.03125, %v2126_v11 }
 0xcfc   : > { %v2132_v2 = vsub.f32 %v3665_v59, %v2130_v15 }
 0xcfd   : > { %v2129_v6 = vpop.xlane.xlu0 %2128 }
 0xcfe   : > { %v2131_v7 = vmul.f32 0.03125, %v2129_v6  ;;  %v2134_v10 = vmul.f32 %v2132_v2, %v2132_v2 }
 0xd00   : > { %v2133_v12 = vsub.f32 %v3670_v4, %v2131_v7  ;;  %v2136_v13 = vsel %vm884_vm1, %v2134_v10, 0.0 }
 0xd01   : > { %2137 = vadd.xlane.f32.xlu0 %v2136_v13 }
 0xd02   : > { %v2135_v14 = vmul.f32 %v2133_v12, %v2133_v12 }
 0xd04   : > { %v2139_v3 = vsel %vm884_vm1, %v2135_v14, 0.0 }
 0xd05   : > { %2140 = vadd.xlane.f32.xlu0 %v2139_v3 }
 0xd8a   : > { %v2138_v45 = vpop.xlane.xlu0 %2137 }
 0xd8b   : > { %v2142_v48 = vmul.f32 0.03125, %v2138_v45 }
 0xd8d   : > { %v2144_v49 = vadd.f32 1e-05, %v2142_v48 }
 0xd8e   : > { %v2141_v18 = vpop.xlane.xlu0 %2140 }
 0xd8f   : > { %3029 = vrsqrt.f32 %v2144_v49  ;;  %v2143_v19 = vmul.f32 0.03125, %v2141_v18 }
 0xd91   : > { %v2145_v20 = vadd.f32 1e-05, %v2143_v19 }
 0xd93   : > { %3031 = vrsqrt.f32 %v2145_v20 }
 0xd9c   : > { %v3030_v21 = vpop.eup %3029 }
 0xd9d   : > { %v2148_v22 = vmul.f32 %v3030_v21, %v2132_v2 }
 0xd9f   : > { %v2156_v8 = vmul.f32 %v2658_v50, %v2148_v22 }
 0xda0   : > { %v3032_v58 = vpop.eup %3031 }
 0xda1   : > { %v2149_v23 = vmul.f32 %v3032_v58, %v2133_v12  ;;  %v2164_v25 = vadd.f32 %v2659_v1, %v2156_v8 }
 0xda3   : > { %v2157_v24 = vmul.f32 %v2658_v50, %v2149_v23 }
 0xda5   : > { %v2165_v26 = vadd.f32 %v2659_v1, %v2157_v24 }
 0xda7   : > { %v2166_v27 = vpack.c.bf16 %v2165_v26, %v2164_v25 }
 0xda9   : > { %2872 = vmatmul.mubr.msk.bf16.vlgmr.msra.gmra.mxu0 %vm884_vm1, %v2166_v27 }
 0xe69   : > { %v2227_v36 = vpop.f32.mrf.mxu0 }
 0xe6a   : > { %v2228_v37 = vadd.f32 %v2660_v35, %v2227_v36 }
 0xe6b   : > { %v2873_v38 = vpop.f32.mrf.mxu0 }
 0xe6c   : > { %v2234_v39 = vmul.f32 -1.702, %v2228_v37 }
 0xe6d   : > { %v2230_v40 = vpop.f32.mrf.mxu0 }
 0xe6e   : > { %v2236_v41 = vmul.f32 1.442695, %v2234_v39  ;;  %v2231_v42 = vadd.f32 %v2660_v35, %v2230_v40 }
 0xe6f   : > { %v2874_v43 = vpop.f32.mrf.mxu0 }
 0xe70   : > { %3033 = vpow2.f32 %v2236_v41  ;;  %v2235_v44 = vmul.f32 -1.702, %v2231_v42 }
 0xe72   : > { %v2238_v46 = vmul.f32 1.442695, %v2235_v44 }
 0xe74   : > { %3035 = vpow2.f32 %v2238_v46 }
 0xe7d   : > { %v3034_v17 = vpop.eup %3033 }
 0xe7e   : > { %v2240_v47 = vadd.f32 1.0, %v3034_v17 }
 0xe80   : > { %3037 = vrcp.f32 %v2240_v47 }
 0xe81   : > { %v3036_v52 = vpop.eup %3035 }
 0xe82   : > { %v2241_v53 = vadd.f32 1.0, %v3036_v52 }
 0xe84   : > { %3039 = vrcp.f32 %v2241_v53 }
 0xe8d   : > { %v3038_v55 = vpop.eup %3037 }
 0xe8e   : > { %v2243_v56 = vmul.f32 %v3038_v55, %v2228_v37 }
 0xe91   : > { %v3040_v54 = vpop.eup %3039 }
 0xe92   : > { %v2245_v57 = vmul.f32 %v3040_v54, %v2231_v42 }
 0xe94   : > { %v2246_v51 = vpack.c.bf16 %v2245_v57, %v2243_v56 }
 0xe96   : > { %2892 = vmatmul.mubr.bf16.vlgmr.msra.gmra.mxu1 %v2246_v51 }
 0xf56   : > { %v2352_v61 = vpop.f32.mrf.mxu1 }
 0xf57   : > { %v2353_v62 = vadd.f32 %v2664_v60, %v2352_v61 }
 0xf58   : > { %v2893_v0 = vpop.f32.mrf.mxu1 }
 0xf59   : > { %v2359_v5 = vadd.f32 %v2353_v62, %v3665_v59 }
 0xf5a   : > { %v2355_v11 = vpop.f32.mrf.mxu1 }
 0xf5b   : > { %2361 = vst.msk [vmem:[#allocation7] sm:$0xff] %vm884_vm1, %v2359_v5  ;;  %v2356_v15 = vadd.f32 %v2664_v60, %v2355_v11 }
 0xf5c   : > { %v2894_v2 = vpop.f32.mrf.mxu1 }
 0xf5d   : > { %v2360_v6 = vadd.f32 %v2356_v15, %v3670_v4 }
 0xf5f   : > { %2362 = vst.msk [vmem:[#allocation7 + $0x8] sm:$0xff] %vm884_vm1, %v2360_v6 }
 0xf60   : > { %3106 = shalt.err (!%p3103_p5)
}
 0xf61   : > { %s3168_s1 = smov 128   ;;  %s3811_s4 = sld [smem:[#allocation24_spill]] }
 0xf67   : > { %2904 = dma.vmem_to_hbm [thread:$0]  (%p3721_p4), %s2373_s27, 256, %s3811_s4, [#allocation4], %s3168_s1, %s3168_s1, %s3164_s0  }
 0xf68   : > { %3138 = dma.done.wait (%p3721_p4), [#allocation4], 256  }
 0xf69   : > { %3140 = vsyncadd (%p3721_p4), [#allocation4], 4294967040 }
 0xf6a PF: > { %s3812_s28 = sld [smem:[#allocation12_spill]] }
 0xf6b   : > { %s3813_s27 = sld [smem:[#allocation11_spill]] }
 0xf70   : > { %s31_s29 = sadd.s32 1, %s3812_s28   ;;  %s3814_s28 = sld [smem:[#allocation13_spill]] }
 0xf71   : > { %p28_p8 = scmp.ge.s32.totalorder %s31_s29, 4  }
 0xf73   :  { %30 = sbr.rel (!%p28_p8) target bundleno = 16 (0x10), region = 180 }
 0xf78   :  { %2388 = vsyncpa [#allocation3], 1 }
 0xf79   :  { %2390 = vsyncpa [#allocation3 + $0x1], 1 }
 0xf7a   :  { %2391 = vsyncpa [#allocation6], 1 }
 0xf7b   :  { %2392 = vsyncpa [#allocation4], 1 }
 0xf7c   :  { %2394 = vsyncpa [#allocation4 + $0x1], 1 }

</bundles_post_ra>
